<compile_context>
chip_gen: v7x
topology: tpu7x:2x2x1
jax: 0.10.0
libtpu: 0.0.40
codegen_flags: <defaults>
</compile_context>

<pallas_src>
import jax
import jax.numpy as jnp
from jax import lax
from jax.experimental import pallas as pl
from jax.experimental.pallas import tpu as pltpu

# ---- small synthetic CLIP-text config (lane-dense last dims) ---------------
B, S = 2, 8                  # batch, seq (== max_pos)
H = 128                      # hidden (multiple of 128 -> unmasked vst)
NUM_HEADS, HEAD_DIM = 4, 32
INTER = 4 * H                # mlp intermediate size
NUM_LAYERS = 2
VOCAB = 49
PROJ = 128                   # text_projection output dim
EPS = 1e-5
NEG = jnp.float32(-1e9)      # additive mask value (stand-in for finfo.min)
R = B * S                    # flattened row count for the final kernel


# ---- math helpers (used inside kernels and by the reference) ---------------
def _layernorm(x, g, b):
    mu = jnp.mean(x, axis=-1, keepdims=True)
    var = jnp.mean((x - mu) ** 2, axis=-1, keepdims=True)
    return (x - mu) * lax.rsqrt(var + EPS) * g + b


def _quick_gelu(x):
    return x * jax.nn.sigmoid(1.702 * x)


# ---- Pallas kernels ---------------------------------------------------------
def clip_layers_kernel(x0_ref, bias_ref,
                       ln1_g, ln1_b, wqkv, bqkv, wo, bo,
                       ln2_g, ln2_b, w1, b1, w2, b2,
                       out_ref):
    """One (batch b, layer l) grid cell.

    The running activation for sequence b is carried in out_ref: its index_map
    is constant over the layer axis, so the block stays VMEM-resident across
    all layers of that batch (no extra scratch, no per-layer HBM round trip).
    Weights arrive as the layer-l slab of the stacked (L, ...) arrays (bf16).
    """
    l = pl.program_id(1)

    @pl.when(l == 0)
    def _():
        out_ref[...] = x0_ref[...]

    x = out_ref[...]                       # (S, H) f32 residual stream
    bias = bias_ref[...]                   # (S, S) f32 causal + padding mask

    # hoisted per-layer parameter reads
    g1, be1 = ln1_g[...], ln1_b[...]
    g2, be2 = ln2_g[...], ln2_b[...]
    b_qkv, b_o = bqkv[...], bo[...]
    b_fc1, b_fc2 = b1[...], b2[...]
    w_o = wo[...]                          # bf16 (H, H)

    # ---- self-attention (pre-LN) ----
    h = _layernorm(x, g1, be1).astype(jnp.bfloat16)
    qkv = jnp.dot(h, wqkv[...], preferred_element_type=jnp.float32) + b_qkv  # (S, 3H)
    # 1/sqrt(head_dim) is folded into the Q columns of wqkv / bqkv at init.
    q = qkv[:, 0 * H:1 * H].astype(jnp.bfloat16)
    k = qkv[:, 1 * H:2 * H].astype(jnp.bfloat16)
    v = qkv[:, 2 * H:3 * H].astype(jnp.bfloat16)

    acc = jnp.zeros((S, H), jnp.float32)   # lane-dense per-head accumulation slab
    for hh in range(NUM_HEADS):            # static, small head loop
        lo = hh * HEAD_DIM
        q_h = q[:, lo:lo + HEAD_DIM]
        k_h = k[:, lo:lo + HEAD_DIM]
        v_h = v[:, lo:lo + HEAD_DIM]
        # contract on the head dim directly (no materialized k.T / relayout)
        s = lax.dot_general(q_h, k_h, (((1,), (1,)), ((), ())),
                            preferred_element_type=jnp.float32) + bias     # (S, S)
        s = s - jnp.max(s, axis=-1, keepdims=True)
        p = jnp.exp(s)
        p = p * pl.reciprocal(jnp.sum(p, axis=-1, keepdims=True), approx=True)
        ctx_h = jnp.dot(p.astype(jnp.bfloat16), v_h,
                        preferred_element_type=jnp.float32)                # (S, HD)
        # fold the head straight into the out-projection: no (S,H) concatenate
        acc = acc + jnp.dot(ctx_h.astype(jnp.bfloat16),
                            w_o[lo:lo + HEAD_DIM, :],
                            preferred_element_type=jnp.float32)
    x1 = x + acc + b_o                      # residual 1 (out-proj bias added once)

    # ---- MLP (pre-LN) ----
    h2 = _layernorm(x1, g2, be2).astype(jnp.bfloat16)
    m = jnp.dot(h2, w1[...], preferred_element_type=jnp.float32) + b_fc1
    m = _quick_gelu(m).astype(jnp.bfloat16)
    x2 = x1 + jnp.dot(m, w2[...], preferred_element_type=jnp.float32) + b_fc2

    out_ref[...] = x2                       # carry to layer l+1 / final writeback


def clip_final_kernel(eos_ref, x_ref, lnf_g, lnf_b, wp,
                      tokens_ref, cls_ref, pooled_sc):
    """Final LayerNorm, eos-token pooling, and text_projection.

    The B pooled rows are gathered into one (B, H) slab (dynamic pl.ds row
    reads) and projected with a single (B,H)@(H,PROJ) dot.
    """
    tokens_ref[...] = _layernorm(x_ref[...], lnf_g[...], lnf_b[...])        # (R, H)
    for b in range(B):                       # static, tiny loop over batch
        row = b * S + eos_ref[b]             # scalar from SMEM
        pooled_sc[pl.ds(b, 1), :] = tokens_ref[pl.ds(row, 1), :]
    cls_ref[...] = jnp.dot(pooled_sc[...], wp[...],
                           preferred_element_type=jnp.float32)              # (B, PROJ)


# ---- pallas_call wrappers ---------------------------------------------------
_VMEM = pl.BlockSpec(memory_space=pltpu.MemorySpace.VMEM)
_SMEM = pl.BlockSpec(memory_space=pltpu.MemorySpace.SMEM)


def run_layers(x0, attn_bias, p):
    def act_spec():
        return pl.BlockSpec((None, S, H), lambda b, l: (b, 0, 0))

    def w_spec(shape):
        # stacked (L, ...) parameter: the layer-l slab per inner grid step;
        # the next layer's slab is prefetched by the BlockSpec pipeline.
        return pl.BlockSpec((None,) + shape,
                            lambda b, l: (l,) + (0,) * len(shape))

    in_specs = [
        act_spec(),                                          # x0 (per-batch, resident)
        pl.BlockSpec((None, S, S), lambda b, l: (b, 0, 0)),  # per-batch additive bias
        w_spec((1, H)), w_spec((1, H)),                      # ln1 g, b
        w_spec((H, 3 * H)), w_spec((1, 3 * H)),              # fused qkv W (bf16), b
        w_spec((H, H)), w_spec((1, H)),                      # out-proj W (bf16), b
        w_spec((1, H)), w_spec((1, H)),                      # ln2 g, b
        w_spec((H, INTER)), w_spec((1, INTER)),              # fc1 W (bf16), b
        w_spec((INTER, H)), w_spec((1, H)),                  # fc2 W (bf16), b
    ]
    return pl.pallas_call(
        clip_layers_kernel,
        out_shape=jax.ShapeDtypeStruct((B, S, H), jnp.float32),
        grid=(B, NUM_LAYERS),
        in_specs=in_specs,
        out_specs=pl.BlockSpec((None, S, H), lambda b, l: (b, 0, 0)),
        compiler_params=pltpu.CompilerParams(
            dimension_semantics=("parallel", "arbitrary"),
            # explicit budget; re-derive at real CLIP sizes (bf16 weights,
            # double-buffered weight pipeline must fit v7x's 64 MiB VMEM).
            vmem_limit_bytes=32 * 1024 * 1024,
        ),
    )(x0, attn_bias,
      p['ln1_g'], p['ln1_b'], p['w_qkv'], p['b_qkv'], p['w_o'], p['b_o'],
      p['ln2_g'], p['ln2_b'], p['w_fc1'], p['b_fc1'], p['w_fc2'], p['b_fc2'])


def run_final(eos_idx, x_flat, lnf_g, lnf_b, wp_t):
    return pl.pallas_call(
        clip_final_kernel,
        out_shape=(jax.ShapeDtypeStruct((R, H), jnp.float32),
                   jax.ShapeDtypeStruct((B, PROJ), jnp.float32)),
        in_specs=[_SMEM, _VMEM, _VMEM, _VMEM, _VMEM],
        out_specs=(_VMEM, _VMEM),
        scratch_shapes=[pltpu.VMEM((B, H), jnp.float32)],
    )(eos_idx, x_flat, lnf_g, lnf_b, wp_t)


# ---- glue: embeddings + per-batch additive attention bias -------------------
def build_attn_bias(input_mask):
    rows = jnp.arange(S)
    causal = jnp.where(rows[None, :] <= rows[:, None], 0.0, NEG)   # (S, S)
    pad = (1.0 - input_mask.astype(jnp.float32)) * NEG             # (B, S)
    return causal[None] + pad[:, None, :]                          # (B, S, S)


def clip_text_forward(token_ids, input_mask, params):
    # TODO(synk): token-embedding gather stays as XLA glue; an in-kernel
    # version needs a manual DMA gather (memory_space=pl.ANY + make_async_copy).
    x0 = params['tok_emb'][token_ids] + params['pos_emb'][:S][None]   # (B, S, H)
    attn_bias = build_attn_bias(input_mask)                           # (B, S, S)

    y = run_layers(x0, attn_bias, params)                             # (B, S, H)

    # HF CLIP pooling convention: eos position = argmax of token ids.
    eos_idx = jnp.argmax(token_ids, axis=-1).astype(jnp.int32)        # (B,)
    tokens_flat, text_cls = run_final(eos_idx, y.reshape(R, H),
                                      params['lnf_g'], params['lnf_b'],
                                      params['wp_t'])
    # all_proj=False (module default): text_tokens returned unprojected.
    return tokens_flat.reshape(B, S, H), text_cls


# ---- pure-JAX reference for validation (f32 math, same parameters) ----------
def ref_forward(token_ids, input_mask, p):
    x = p['tok_emb'][token_ids] + p['pos_emb'][:S][None]
    bias = build_attn_bias(input_mask)                                # (B, S, S)
    for l in range(NUM_LAYERS):
        h = _layernorm(x, p['ln1_g'][l], p['ln1_b'][l])
        qkv = h @ p['w_qkv'][l].astype(jnp.float32) + p['b_qkv'][l]
        q, k, v = jnp.split(qkv, 3, axis=-1)
        # 1/sqrt(head_dim) already folded into the Q weights/bias at init.
        q = q.reshape(B, S, NUM_HEADS, HEAD_DIM).transpose(0, 2, 1, 3)
        k = k.reshape(B, S, NUM_HEADS, HEAD_DIM).transpose(0, 2, 1, 3)
        v = v.reshape(B, S, NUM_HEADS, HEAD_DIM).transpose(0, 2, 1, 3)
        s = jnp.einsum('bhqd,bhkd->bhqk', q, k) + bias[:, None]
        pa = jax.nn.softmax(s, axis=-1)
        ctx = jnp.einsum('bhqk,bhkd->bhqd', pa, v).transpose(0, 2, 1, 3).reshape(B, S, H)
        x = x + ctx @ p['w_o'][l].astype(jnp.float32) + p['b_o'][l]
        h2 = _layernorm(x, p['ln2_g'][l], p['ln2_b'][l])
        x = x + _quick_gelu(h2 @ p['w_fc1'][l].astype(jnp.float32)
                            + p['b_fc1'][l]) @ p['w_fc2'][l].astype(jnp.float32) + p['b_fc2'][l]
    tokens = _layernorm(x, p['lnf_g'], p['lnf_b'])
    eos_idx = jnp.argmax(token_ids, axis=-1)
    cls = tokens[jnp.arange(B), eos_idx] @ p['wp_t']
    return tokens, cls


# ---- deterministic parameter init (stacked per-layer weights, bf16) ---------
def init_params(key):
    def norm(k, shape, scale=0.02):
        return (scale * jax.random.normal(k, shape)).astype(jnp.float32)

    keys = jax.random.split(key, 11)
    L = NUM_LAYERS
    attn_scale = HEAD_DIM ** -0.5

    w_qkv = norm(keys[3], (L, H, 3 * H))
    b_qkv = norm(keys[4], (L, 1, 3 * H))
    # fold 1/sqrt(head_dim) into the Q columns (one-time weight transform,
    # removes a per-layer (S,H) VALU multiply at runtime).
    w_qkv = w_qkv.at[:, :, :H].multiply(attn_scale)
    b_qkv = b_qkv.at[:, :, :H].multiply(attn_scale)

    params = {
        'tok_emb': norm(keys[0], (VOCAB, H)),
        'pos_emb': norm(keys[1], (S, H)),
        'lnf_g': jnp.ones((1, H), jnp.float32),
        'lnf_b': jnp.zeros((1, H), jnp.float32),
        # text_projection (Linear, bias=False), pre-transposed to (in, out)
        'wp_t': norm(keys[2], (H, PROJ)),
        # per-layer params stacked on a leading layer axis; big weights in bf16
        # so the streamed weight DMA is half the bytes (int8 on v5e/v6e, fp8 on
        # v7x would halve it again).
        'ln1_g': jnp.ones((L, 1, H), jnp.float32),
        'ln1_b': jnp.zeros((L, 1, H), jnp.float32),
        'w_qkv': w_qkv.astype(jnp.bfloat16),      # fused [q|k|v], (in, out)
        'b_qkv': b_qkv,
        'w_o': norm(keys[5], (L, H, H)).astype(jnp.bfloat16),
        'b_o': norm(keys[6], (L, 1, H)),
        'ln2_g': jnp.ones((L, 1, H), jnp.float32),
        'ln2_b': jnp.zeros((L, 1, H), jnp.float32),
        'w_fc1': norm(keys[7], (L, H, INTER)).astype(jnp.bfloat16),
        'b_fc1': norm(keys[8], (L, 1, INTER)),
        'w_fc2': norm(keys[9], (L, INTER, H)).astype(jnp.bfloat16),
        'b_fc2': norm(keys[10], (L, 1, H)),
    }
    return params


if __name__ == "__main__":
    key = jax.random.PRNGKey(0)
    kp, kt = jax.random.split(key)
    params = init_params(kp)

    token_ids = jax.random.randint(kt, (B, S), 0, VOCAB, dtype=jnp.int32)
    input_mask = jnp.array([[1] * S, [1] * (S - 2) + [0] * 2], dtype=jnp.int32)

    fwd = jax.jit(clip_text_forward)
    text_tokens, text_cls = fwd(token_ids, input_mask, params)
    jax.block_until_ready((text_tokens, text_cls))

    ref_tokens, ref_cls = ref_forward(token_ids, input_mask, params)
    # Kernel matmuls use bf16 operands (f32 accumulate) + approx reciprocal in
    # the softmax; the reference is full f32, hence the loosened tolerance.
    assert jnp.allclose(text_tokens, ref_tokens, atol=3e-2, rtol=3e-2), "text_tokens mismatch"
    assert jnp.allclose(text_cls, ref_cls, atol=3e-2, rtol=3e-2), "text_cls mismatch"

    print("KERNEL_OK")
</pallas_src>

<mosaic_0001>
module attributes {stable_mosaic.version = 11 : i64} {
  func.func @clip_final_kernel(%arg0: memref<2xi32, #tpu.memory_space<smem>>, %arg1: memref<16x128xf32, #tpu.memory_space<vmem>>, %arg2: memref<1x128xf32, #tpu.memory_space<vmem>>, %arg3: memref<1x128xf32, #tpu.memory_space<vmem>>, %arg4: memref<128x128xf32, #tpu.memory_space<vmem>>, %arg5: memref<16x128xf32, #tpu.memory_space<vmem>>, %arg6: memref<2x128xf32, #tpu.memory_space<vmem>>, %arg7: memref<2x128xf32, #tpu.memory_space<vmem>>) attributes {dimension_semantics = [], scalar_prefetch = 0 : i64, scratch_operands = 1 : i64, tpu.core_type = #tpu.core_type<tc>} {
    %c0 = arith.constant 0 : index
    %c0_0 = arith.constant 0 : index
    %0 = vector.load %arg1[%c0, %c0_0] : memref<16x128xf32, #tpu.memory_space<vmem>>, vector<16x128xf32>
    %c0_1 = arith.constant 0 : index
    %c0_2 = arith.constant 0 : index
    %1 = vector.load %arg2[%c0_1, %c0_2] : memref<1x128xf32, #tpu.memory_space<vmem>>, vector<1x128xf32>
    %c0_3 = arith.constant 0 : index
    %c0_4 = arith.constant 0 : index
    %2 = vector.load %arg3[%c0_3, %c0_4] : memref<1x128xf32, #tpu.memory_space<vmem>>, vector<1x128xf32>
    %cst = arith.constant dense<0.000000e+00> : vector<16xf32>
    %3 = vector.multi_reduction <add>, %0, %cst [1] : vector<16x128xf32> to vector<16xf32>
    %4 = vector.shape_cast %3 : vector<16xf32> to vector<16x1xf32>
    %cst_5 = arith.constant 1.280000e+02 : f32
    %5 = vector.broadcast %cst_5 : f32 to vector<16x1xf32>
    %6 = arith.divf %4, %5 : vector<16x1xf32>
    %7 = vector.broadcast %6 : vector<16x1xf32> to vector<16x128xf32>
    %8 = arith.subf %0, %7 : vector<16x128xf32>
    %9 = arith.mulf %8, %8 : vector<16x128xf32>
    %cst_6 = arith.constant dense<0.000000e+00> : vector<16xf32>
    %10 = vector.multi_reduction <add>, %9, %cst_6 [1] : vector<16x128xf32> to vector<16xf32>
    %11 = vector.shape_cast %10 : vector<16xf32> to vector<16x1xf32>
    %cst_7 = arith.constant 1.280000e+02 : f32
    %12 = vector.broadcast %cst_7 : f32 to vector<16x1xf32>
    %13 = arith.divf %11, %12 : vector<16x1xf32>
    %14 = vector.broadcast %6 : vector<16x1xf32> to vector<16x128xf32>
    %15 = arith.subf %0, %14 : vector<16x128xf32>
    %cst_8 = arith.constant 9.99999974E-6 : f32
    %16 = vector.broadcast %cst_8 : f32 to vector<16x1xf32>
    %17 = arith.addf %13, %16 : vector<16x1xf32>
    %18 = math.rsqrt %17 : vector<16x1xf32>
    %19 = vector.broadcast %18 : vector<16x1xf32> to vector<16x128xf32>
    %20 = arith.mulf %15, %19 : vector<16x128xf32>
    %21 = vector.broadcast %1 : vector<1x128xf32> to vector<16x128xf32>
    %22 = arith.mulf %20, %21 : vector<16x128xf32>
    %23 = vector.broadcast %2 : vector<1x128xf32> to vector<16x128xf32>
    %24 = arith.addf %22, %23 : vector<16x128xf32>
    %c0_9 = arith.constant 0 : index
    %c0_10 = arith.constant 0 : index
    %25 = vector.load %arg5[%c0_9, %c0_10] : memref<16x128xf32, #tpu.memory_space<vmem>>, vector<16x128xf32>
    tpu.vector_store %arg5[%c0_9, %c0_10], %24 {strides = array<i32>} : memref<16x128xf32, #tpu.memory_space<vmem>>, vector<16x128xf32>,
    %c0_11 = arith.constant 0 : index
    %26 = memref.load %arg0[%c0_11] : memref<2xi32, #tpu.memory_space<smem>>
    %c0_i32 = arith.constant 0 : i32
    %27 = arith.addi %c0_i32, %26 : i32
    %28 = arith.index_cast %27 : i32 to index
    %c0_12 = arith.constant 0 : index
    %29 = vector.load %arg5[%28, %c0_12] : memref<16x128xf32, #tpu.memory_space<vmem>>, vector<1x128xf32>
    %c0_13 = arith.constant 0 : index
    %c0_14 = arith.constant 0 : index
    %30 = vector.load %arg7[%c0_13, %c0_14] : memref<2x128xf32, #tpu.memory_space<vmem>>, vector<1x128xf32>
    tpu.vector_store %arg7[%c0_13, %c0_14], %29 {strides = array<i32>} : memref<2x128xf32, #tpu.memory_space<vmem>>, vector<1x128xf32>,
    %c1 = arith.constant 1 : index
    %31 = memref.load %arg0[%c1] : memref<2xi32, #tpu.memory_space<smem>>
    %c8_i32 = arith.constant 8 : i32
    %32 = arith.addi %c8_i32, %31 : i32
    %33 = arith.index_cast %32 : i32 to index
    %c0_15 = arith.constant 0 : index
    %34 = vector.load %arg5[%33, %c0_15] : memref<16x128xf32, #tpu.memory_space<vmem>>, vector<1x128xf32>
    %c1_16 = arith.constant 1 : index
    %c0_17 = arith.constant 0 : index
    %35 = vector.load %arg7[%c1_16, %c0_17] : memref<2x128xf32, #tpu.memory_space<vmem>>, vector<1x128xf32>
    tpu.vector_store %arg7[%c1_16, %c0_17], %34 {strides = array<i32>} : memref<2x128xf32, #tpu.memory_space<vmem>>, vector<1x128xf32>,
    %c0_18 = arith.constant 0 : index
    %c0_19 = arith.constant 0 : index
    %36 = vector.load %arg7[%c0_18, %c0_19] : memref<2x128xf32, #tpu.memory_space<vmem>>, vector<2x128xf32>
    %c0_20 = arith.constant 0 : index
    %c0_21 = arith.constant 0 : index
    %37 = vector.load %arg4[%c0_20, %c0_21] : memref<128x128xf32, #tpu.memory_space<vmem>>, vector<128x128xf32>
    %cst_22 = arith.constant dense<0.000000e+00> : vector<2x128xf32>
    %38 = tpu.matmul %36, %37, %cst_22 {dimension_numbers = #tpu.dot_dimension_numbers<[1], [0], [0], [1], [0, 0, 1, 1], [], []>} : vector<2x128xf32>, vector<128x128xf32>, vector<2x128xf32> -> vector<2x128xf32>
    %c0_23 = arith.constant 0 : index
    %c0_24 = arith.constant 0 : index
    %39 = vector.load %arg6[%c0_23, %c0_24] : memref<2x128xf32, #tpu.memory_space<vmem>>, vector<2x128xf32>
    tpu.vector_store %arg6[%c0_23, %c0_24], %38 {strides = array<i32>} : memref<2x128xf32, #tpu.memory_space<vmem>>, vector<2x128xf32>,
    return
  }
}

module attributes {stable_mosaic.version = 11 : i64} {
  func.func @clip_layers_kernel(%arg0: i32, %arg1: i32, %arg2: memref<1x8x128xf32, #tpu.memory_space<vmem>>, %arg3: memref<1x8x8xf32, #tpu.memory_space<vmem>>, %arg4: memref<1x1x128xf32, #tpu.memory_space<vmem>>, %arg5: memref<1x1x128xf32, #tpu.memory_space<vmem>>, %arg6: memref<1x128x384xbf16, #tpu.memory_space<vmem>>, %arg7: memref<1x1x384xf32, #tpu.memory_space<vmem>>, %arg8: memref<1x128x128xbf16, #tpu.memory_space<vmem>>, %arg9: memref<1x1x128xf32, #tpu.memory_space<vmem>>, %arg10: memref<1x1x128xf32, #tpu.memory_space<vmem>>, %arg11: memref<1x1x128xf32, #tpu.memory_space<vmem>>, %arg12: memref<1x128x512xbf16, #tpu.memory_space<vmem>>, %arg13: memref<1x1x512xf32, #tpu.memory_space<vmem>>, %arg14: memref<1x512x128xbf16, #tpu.memory_space<vmem>>, %arg15: memref<1x1x128xf32, #tpu.memory_space<vmem>>, %arg16: memref<1x8x128xf32, #tpu.memory_space<vmem>>) attributes {dimension_semantics = [#tpu.dimension_semantics<parallel>, #tpu.dimension_semantics<arbitrary>], iteration_bounds = array<i64: 2, 2>, scalar_prefetch = 0 : i64, scratch_operands = 0 : i64, tpu.core_type = #tpu.core_type<tc>, window_params = [{transform_indices = @transform_0, window_bounds = array<i64: 1, 8, 128>}, {transform_indices = @transform_1, window_bounds = array<i64: 1, 8, 8>}, {transform_indices = @transform_2, window_bounds = array<i64: 1, 1, 128>}, {transform_indices = @transform_3, window_bounds = array<i64: 1, 1, 128>}, {transform_indices = @transform_4, window_bounds = array<i64: 1, 128, 384>}, {transform_indices = @transform_5, window_bounds = array<i64: 1, 1, 384>}, {transform_indices = @transform_6, window_bounds = array<i64: 1, 128, 128>}, {transform_indices = @transform_7, window_bounds = array<i64: 1, 1, 128>}, {transform_indices = @transform_8, window_bounds = array<i64: 1, 1, 128>}, {transform_indices = @transform_9, window_bounds = array<i64: 1, 1, 128>}, {transform_indices = @transform_10, window_bounds = array<i64: 1, 128, 512>}, {transform_indices = @transform_11, window_bounds = array<i64: 1, 1, 512>}, {transform_indices = @transform_12, window_bounds = array<i64: 1, 512, 128>}, {transform_indices = @transform_13, window_bounds = array<i64: 1, 1, 128>}, {transform_indices = @transform_14, window_bounds = array<i64: 1, 8, 128>}]} {
    %c0_i32 = arith.constant 0 : i32
    %0 = arith.cmpi eq, %arg1, %c0_i32 : i32
    %1 = arith.extui %0 : i1 to i32
    %c0_i32_0 = arith.constant 0 : i32
    %2 = arith.cmpi ne, %1, %c0_i32_0 : i32
    scf.if %2 {
      %c0_80 = arith.constant 0 : index
      %c0_81 = arith.constant 0 : index
      %c0_82 = arith.constant 0 : index
      %193 = vector.load %arg2[%c0_80, %c0_81, %c0_82] : memref<1x8x128xf32, #tpu.memory_space<vmem>>, vector<1x8x128xf32>
      %194 = vector.shape_cast %193 : vector<1x8x128xf32> to vector<8x128xf32>
      %c0_83 = arith.constant 0 : index
      %c0_84 = arith.constant 0 : index
      %c0_85 = arith.constant 0 : index
      %195 = vector.load %arg16[%c0_83, %c0_84, %c0_85] : memref<1x8x128xf32, #tpu.memory_space<vmem>>, vector<1x8x128xf32>
      %196 = vector.shape_cast %195 : vector<1x8x128xf32> to vector<8x128xf32>
      %197 = vector.shape_cast %194 : vector<8x128xf32> to vector<1x8x128xf32>
      tpu.vector_store %arg16[%c0_83, %c0_84, %c0_85], %197 {strides = array<i32>} : memref<1x8x128xf32, #tpu.memory_space<vmem>>, vector<1x8x128xf32>,
    } else {
    }
    %c0 = arith.constant 0 : index
    %c0_1 = arith.constant 0 : index
    %c0_2 = arith.constant 0 : index
    %3 = vector.load %arg16[%c0, %c0_1, %c0_2] : memref<1x8x128xf32, #tpu.memory_space<vmem>>, vector<1x8x128xf32>
    %4 = vector.shape_cast %3 : vector<1x8x128xf32> to vector<8x128xf32>
    %c0_3 = arith.constant 0 : index
    %c0_4 = arith.constant 0 : index
    %c0_5 = arith.constant 0 : index
    %5 = vector.load %arg3[%c0_3, %c0_4, %c0_5] : memref<1x8x8xf32, #tpu.memory_space<vmem>>, vector<1x8x8xf32>
    %6 = vector.shape_cast %5 : vector<1x8x8xf32> to vector<8x8xf32>
    %c0_6 = arith.constant 0 : index
    %c0_7 = arith.constant 0 : index
    %c0_8 = arith.constant 0 : index
    %7 = vector.load %arg4[%c0_6, %c0_7, %c0_8] : memref<1x1x128xf32, #tpu.memory_space<vmem>>, vector<1x1x128xf32>
    %8 = vector.shape_cast %7 : vector<1x1x128xf32> to vector<1x128xf32>
    %c0_9 = arith.constant 0 : index
    %c0_10 = arith.constant 0 : index
    %c0_11 = arith.constant 0 : index
    %9 = vector.load %arg5[%c0_9, %c0_10, %c0_11] : memref<1x1x128xf32, #tpu.memory_space<vmem>>, vector<1x1x128xf32>
    %10 = vector.shape_cast %9 : vector<1x1x128xf32> to vector<1x128xf32>
    %c0_12 = arith.constant 0 : index
    %c0_13 = arith.constant 0 : index
    %c0_14 = arith.constant 0 : index
    %11 = vector.load %arg10[%c0_12, %c0_13, %c0_14] : memref<1x1x128xf32, #tpu.memory_space<vmem>>, vector<1x1x128xf32>
    %12 = vector.shape_cast %11 : vector<1x1x128xf32> to vector<1x128xf32>
    %c0_15 = arith.constant 0 : index
    %c0_16 = arith.constant 0 : index
    %c0_17 = arith.constant 0 : index
    %13 = vector.load %arg11[%c0_15, %c0_16, %c0_17] : memref<1x1x128xf32, #tpu.memory_space<vmem>>, vector<1x1x128xf32>
    %14 = vector.shape_cast %13 : vector<1x1x128xf32> to vector<1x128xf32>
    %c0_18 = arith.constant 0 : index
    %c0_19 = arith.constant 0 : index
    %c0_20 = arith.constant 0 : index
    %15 = vector.load %arg7[%c0_18, %c0_19, %c0_20] : memref<1x1x384xf32, #tpu.memory_space<vmem>>, vector<1x1x384xf32>
    %16 = vector.shape_cast %15 : vector<1x1x384xf32> to vector<1x384xf32>
    %c0_21 = arith.constant 0 : index
    %c0_22 = arith.constant 0 : index
    %c0_23 = arith.constant 0 : index
    %17 = vector.load %arg9[%c0_21, %c0_22, %c0_23] : memref<1x1x128xf32, #tpu.memory_space<vmem>>, vector<1x1x128xf32>
    %18 = vector.shape_cast %17 : vector<1x1x128xf32> to vector<1x128xf32>
    %c0_24 = arith.constant 0 : index
    %c0_25 = arith.constant 0 : index
    %c0_26 = arith.constant 0 : index
    %19 = vector.load %arg13[%c0_24, %c0_25, %c0_26] : memref<1x1x512xf32, #tpu.memory_space<vmem>>, vector<1x1x512xf32>
    %20 = vector.shape_cast %19 : vector<1x1x512xf32> to vector<1x512xf32>
    %c0_27 = arith.constant 0 : index
    %c0_28 = arith.constant 0 : index
    %c0_29 = arith.constant 0 : index
    %21 = vector.load %arg15[%c0_27, %c0_28, %c0_29] : memref<1x1x128xf32, #tpu.memory_space<vmem>>, vector<1x1x128xf32>
    %22 = vector.shape_cast %21 : vector<1x1x128xf32> to vector<1x128xf32>
    %c0_30 = arith.constant 0 : index
    %c0_31 = arith.constant 0 : index
    %c0_32 = arith.constant 0 : index
    %23 = vector.load %arg8[%c0_30, %c0_31, %c0_32] : memref<1x128x128xbf16, #tpu.memory_space<vmem>>, vector<1x128x128xbf16>
    %24 = vector.shape_cast %23 : vector<1x128x128xbf16> to vector<128x128xbf16>
    %cst = arith.constant dense<0.000000e+00> : vector<8xf32>
    %25 = vector.multi_reduction <add>, %4, %cst [1] : vector<8x128xf32> to vector<8xf32>
    %26 = vector.shape_cast %25 : vector<8xf32> to vector<8x1xf32>
    %cst_33 = arith.constant 1.280000e+02 : f32
    %27 = vector.broadcast %cst_33 : f32 to vector<8x1xf32>
    %28 = arith.divf %26, %27 : vector<8x1xf32>
    %29 = vector.broadcast %28 : vector<8x1xf32> to vector<8x128xf32>
    %30 = arith.subf %4, %29 : vector<8x128xf32>
    %31 = arith.mulf %30, %30 : vector<8x128xf32>
    %cst_34 = arith.constant dense<0.000000e+00> : vector<8xf32>
    %32 = vector.multi_reduction <add>, %31, %cst_34 [1] : vector<8x128xf32> to vector<8xf32>
    %33 = vector.shape_cast %32 : vector<8xf32> to vector<8x1xf32>
    %cst_35 = arith.constant 1.280000e+02 : f32
    %34 = vector.broadcast %cst_35 : f32 to vector<8x1xf32>
    %35 = arith.divf %33, %34 : vector<8x1xf32>
    %36 = vector.broadcast %28 : vector<8x1xf32> to vector<8x128xf32>
    %37 = arith.subf %4, %36 : vector<8x128xf32>
    %cst_36 = arith.constant 9.99999974E-6 : f32
    %38 = vector.broadcast %cst_36 : f32 to vector<8x1xf32>
    %39 = arith.addf %35, %38 : vector<8x1xf32>
    %40 = math.rsqrt %39 : vector<8x1xf32>
    %41 = vector.broadcast %40 : vector<8x1xf32> to vector<8x128xf32>
    %42 = arith.mulf %37, %41 : vector<8x128xf32>
    %43 = vector.broadcast %8 : vector<1x128xf32> to vector<8x128xf32>
    %44 = arith.mulf %42, %43 : vector<8x128xf32>
    %45 = vector.broadcast %10 : vector<1x128xf32> to vector<8x128xf32>
    %46 = arith.addf %44, %45 : vector<8x128xf32>
    %47 = arith.truncf %46 : vector<8x128xf32> to vector<8x128xbf16>
    %c0_37 = arith.constant 0 : index
    %c0_38 = arith.constant 0 : index
    %c0_39 = arith.constant 0 : index
    %48 = vector.load %arg6[%c0_37, %c0_38, %c0_39] : memref<1x128x384xbf16, #tpu.memory_space<vmem>>, vector<1x128x384xbf16>
    %49 = vector.shape_cast %48 : vector<1x128x384xbf16> to vector<128x384xbf16>
    %cst_40 = arith.constant dense<0.000000e+00> : vector<8x384xf32>
    %50 = tpu.matmul %47, %49, %cst_40 {dimension_numbers = #tpu.dot_dimension_numbers<[1], [0], [0], [1], [0, 0, 1, 1], [], []>} : vector<8x128xbf16>, vector<128x384xbf16>, vector<8x384xf32> -> vector<8x384xf32>
    %51 = vector.broadcast %16 : vector<1x384xf32> to vector<8x384xf32>
    %52 = arith.addf %50, %51 : vector<8x384xf32>
    %53 = vector.extract_strided_slice %52 {offsets = [0, 0], sizes = [8, 128], strides = [1, 1]} : vector<8x384xf32> to vector<8x128xf32>
    %54 = arith.truncf %53 : vector<8x128xf32> to vector<8x128xbf16>
    %55 = vector.extract_strided_slice %52 {offsets = [0, 128], sizes = [8, 128], strides = [1, 1]} : vector<8x384xf32> to vector<8x128xf32>
    %56 = arith.truncf %55 : vector<8x128xf32> to vector<8x128xbf16>
    %57 = vector.extract_strided_slice %52 {offsets = [0, 256], sizes = [8, 128], strides = [1, 1]} : vector<8x384xf32> to vector<8x128xf32>
    %58 = arith.truncf %57 : vector<8x128xf32> to vector<8x128xbf16>
    %cst_41 = arith.constant 0.000000e+00 : f32
    %59 = vector.broadcast %cst_41 : f32 to vector<8x128xf32>
    %60 = vector.extract_strided_slice %54 {offsets = [0, 0], sizes = [8, 32], strides = [1, 1]} : vector<8x128xbf16> to vector<8x32xbf16>
    %61 = vector.extract_strided_slice %56 {offsets = [0, 0], sizes = [8, 32], strides = [1, 1]} : vector<8x128xbf16> to vector<8x32xbf16>
    %62 = vector.extract_strided_slice %58 {offsets = [0, 0], sizes = [8, 32], strides = [1, 1]} : vector<8x128xbf16> to vector<8x32xbf16>
    %cst_42 = arith.constant dense<0.000000e+00> : vector<8x8xf32>
    %63 = tpu.matmul %60, %61, %cst_42 {dimension_numbers = #tpu.dot_dimension_numbers<[1], [1], [0], [0], [0, 0, 1, 0], [], []>} : vector<8x32xbf16>, vector<8x32xbf16>, vector<8x8xf32> -> vector<8x8xf32>
    %64 = arith.addf %63, %6 : vector<8x8xf32>
    %cst_43 = arith.constant dense<0xFF800000> : vector<8xf32>
    %65 = vector.multi_reduction <maximumf>, %64, %cst_43 [1] : vector<8x8xf32> to vector<8xf32>
    %66 = vector.shape_cast %65 : vector<8xf32> to vector<8x1xf32>
    %67 = vector.broadcast %66 : vector<8x1xf32> to vector<8x8xf32>
    %68 = arith.subf %64, %67 : vector<8x8xf32>
    %69 = math.exp %68 : vector<8x8xf32>
    %cst_44 = arith.constant dense<0.000000e+00> : vector<8xf32>
    %70 = vector.multi_reduction <add>, %69, %cst_44 [1] : vector<8x8xf32> to vector<8xf32>
    %71 = vector.shape_cast %70 : vector<8xf32> to vector<8x1xf32>
    %72 = tpu.reciprocal %71 {approx = true} : vector<8x1xf32> -> vector<8x1xf32>
    %73 = vector.broadcast %72 : vector<8x1xf32> to vector<8x8xf32>
    %74 = arith.mulf %69, %73 : vector<8x8xf32>
    %75 = arith.truncf %74 : vector<8x8xf32> to vector<8x8xbf16>
    %cst_45 = arith.constant dense<0.000000e+00> : vector<8x32xf32>
    %76 = tpu.matmul %75, %62, %cst_45 {dimension_numbers = #tpu.dot_dimension_numbers<[1], [0], [0], [1], [0, 0, 1, 1], [], []>} : vector<8x8xbf16>, vector<8x32xbf16>, vector<8x32xf32> -> vector<8x32xf32>
    %77 = arith.truncf %76 : vector<8x32xf32> to vector<8x32xbf16>
    %78 = vector.extract_strided_slice %24 {offsets = [0, 0], sizes = [32, 128], strides = [1, 1]} : vector<128x128xbf16> to vector<32x128xbf16>
    %cst_46 = arith.constant dense<0.000000e+00> : vector<8x128xf32>
    %79 = tpu.matmul %77, %78, %cst_46 {dimension_numbers = #tpu.dot_dimension_numbers<[1], [0], [0], [1], [0, 0, 1, 1], [], []>} : vector<8x32xbf16>, vector<32x128xbf16>, vector<8x128xf32> -> vector<8x128xf32>
    %80 = arith.addf %59, %79 : vector<8x128xf32>
    %81 = vector.extract_strided_slice %54 {offsets = [0, 32], sizes = [8, 32], strides = [1, 1]} : vector<8x128xbf16> to vector<8x32xbf16>
    %82 = vector.extract_strided_slice %56 {offsets = [0, 32], sizes = [8, 32], strides = [1, 1]} : vector<8x128xbf16> to vector<8x32xbf16>
    %83 = vector.extract_strided_slice %58 {offsets = [0, 32], sizes = [8, 32], strides = [1, 1]} : vector<8x128xbf16> to vector<8x32xbf16>
    %cst_47 = arith.constant dense<0.000000e+00> : vector<8x8xf32>
    %84 = tpu.matmul %81, %82, %cst_47 {dimension_numbers = #tpu.dot_dimension_numbers<[1], [1], [0], [0], [0, 0, 1, 0], [], []>} : vector<8x32xbf16>, vector<8x32xbf16>, vector<8x8xf32> -> vector<8x8xf32>
    %85 = arith.addf %84, %6 : vector<8x8xf32>
    %cst_48 = arith.constant dense<0xFF800000> : vector<8xf32>
    %86 = vector.multi_reduction <maximumf>, %85, %cst_48 [1] : vector<8x8xf32> to vector<8xf32>
    %87 = vector.shape_cast %86 : vector<8xf32> to vector<8x1xf32>
    %88 = vector.broadcast %87 : vector<8x1xf32> to vector<8x8xf32>
    %89 = arith.subf %85, %88 : vector<8x8xf32>
    %90 = math.exp %89 : vector<8x8xf32>
    %cst_49 = arith.constant dense<0.000000e+00> : vector<8xf32>
    %91 = vector.multi_reduction <add>, %90, %cst_49 [1] : vector<8x8xf32> to vector<8xf32>
    %92 = vector.shape_cast %91 : vector<8xf32> to vector<8x1xf32>
    %93 = tpu.reciprocal %92 {approx = true} : vector<8x1xf32> -> vector<8x1xf32>
    %94 = vector.broadcast %93 : vector<8x1xf32> to vector<8x8xf32>
    %95 = arith.mulf %90, %94 : vector<8x8xf32>
    %96 = arith.truncf %95 : vector<8x8xf32> to vector<8x8xbf16>
    %cst_50 = arith.constant dense<0.000000e+00> : vector<8x32xf32>
    %97 = tpu.matmul %96, %83, %cst_50 {dimension_numbers = #tpu.dot_dimension_numbers<[1], [0], [0], [1], [0, 0, 1, 1], [], []>} : vector<8x8xbf16>, vector<8x32xbf16>, vector<8x32xf32> -> vector<8x32xf32>
    %98 = arith.truncf %97 : vector<8x32xf32> to vector<8x32xbf16>
    %99 = vector.extract_strided_slice %24 {offsets = [32, 0], sizes = [32, 128], strides = [1, 1]} : vector<128x128xbf16> to vector<32x128xbf16>
    %cst_51 = arith.constant dense<0.000000e+00> : vector<8x128xf32>
    %100 = tpu.matmul %98, %99, %cst_51 {dimension_numbers = #tpu.dot_dimension_numbers<[1], [0], [0], [1], [0, 0, 1, 1], [], []>} : vector<8x32xbf16>, vector<32x128xbf16>, vector<8x128xf32> -> vector<8x128xf32>
    %101 = arith.addf %80, %100 : vector<8x128xf32>
    %102 = vector.extract_strided_slice %54 {offsets = [0, 64], sizes = [8, 32], strides = [1, 1]} : vector<8x128xbf16> to vector<8x32xbf16>
    %103 = vector.extract_strided_slice %56 {offsets = [0, 64], sizes = [8, 32], strides = [1, 1]} : vector<8x128xbf16> to vector<8x32xbf16>
    %104 = vector.extract_strided_slice %58 {offsets = [0, 64], sizes = [8, 32], strides = [1, 1]} : vector<8x128xbf16> to vector<8x32xbf16>
    %cst_52 = arith.constant dense<0.000000e+00> : vector<8x8xf32>
    %105 = tpu.matmul %102, %103, %cst_52 {dimension_numbers = #tpu.dot_dimension_numbers<[1], [1], [0], [0], [0, 0, 1, 0], [], []>} : vector<8x32xbf16>, vector<8x32xbf16>, vector<8x8xf32> -> vector<8x8xf32>
    %106 = arith.addf %105, %6 : vector<8x8xf32>
    %cst_53 = arith.constant dense<0xFF800000> : vector<8xf32>
    %107 = vector.multi_reduction <maximumf>, %106, %cst_53 [1] : vector<8x8xf32> to vector<8xf32>
    %108 = vector.shape_cast %107 : vector<8xf32> to vector<8x1xf32>
    %109 = vector.broadcast %108 : vector<8x1xf32> to vector<8x8xf32>
    %110 = arith.subf %106, %109 : vector<8x8xf32>
    %111 = math.exp %110 : vector<8x8xf32>
    %cst_54 = arith.constant dense<0.000000e+00> : vector<8xf32>
    %112 = vector.multi_reduction <add>, %111, %cst_54 [1] : vector<8x8xf32> to vector<8xf32>
    %113 = vector.shape_cast %112 : vector<8xf32> to vector<8x1xf32>
    %114 = tpu.reciprocal %113 {approx = true} : vector<8x1xf32> -> vector<8x1xf32>
    %115 = vector.broadcast %114 : vector<8x1xf32> to vector<8x8xf32>
    %116 = arith.mulf %111, %115 : vector<8x8xf32>
    %117 = arith.truncf %116 : vector<8x8xf32> to vector<8x8xbf16>
    %cst_55 = arith.constant dense<0.000000e+00> : vector<8x32xf32>
    %118 = tpu.matmul %117, %104, %cst_55 {dimension_numbers = #tpu.dot_dimension_numbers<[1], [0], [0], [1], [0, 0, 1, 1], [], []>} : vector<8x8xbf16>, vector<8x32xbf16>, vector<8x32xf32> -> vector<8x32xf32>
    %119 = arith.truncf %118 : vector<8x32xf32> to vector<8x32xbf16>
    %120 = vector.extract_strided_slice %24 {offsets = [64, 0], sizes = [32, 128], strides = [1, 1]} : vector<128x128xbf16> to vector<32x128xbf16>
    %cst_56 = arith.constant dense<0.000000e+00> : vector<8x128xf32>
    %121 = tpu.matmul %119, %120, %cst_56 {dimension_numbers = #tpu.dot_dimension_numbers<[1], [0], [0], [1], [0, 0, 1, 1], [], []>} : vector<8x32xbf16>, vector<32x128xbf16>, vector<8x128xf32> -> vector<8x128xf32>
    %122 = arith.addf %101, %121 : vector<8x128xf32>
    %123 = vector.extract_strided_slice %54 {offsets = [0, 96], sizes = [8, 32], strides = [1, 1]} : vector<8x128xbf16> to vector<8x32xbf16>
    %124 = vector.extract_strided_slice %56 {offsets = [0, 96], sizes = [8, 32], strides = [1, 1]} : vector<8x128xbf16> to vector<8x32xbf16>
    %125 = vector.extract_strided_slice %58 {offsets = [0, 96], sizes = [8, 32], strides = [1, 1]} : vector<8x128xbf16> to vector<8x32xbf16>
    %cst_57 = arith.constant dense<0.000000e+00> : vector<8x8xf32>
    %126 = tpu.matmul %123, %124, %cst_57 {dimension_numbers = #tpu.dot_dimension_numbers<[1], [1], [0], [0], [0, 0, 1, 0], [], []>} : vector<8x32xbf16>, vector<8x32xbf16>, vector<8x8xf32> -> vector<8x8xf32>
    %127 = arith.addf %126, %6 : vector<8x8xf32>
    %cst_58 = arith.constant dense<0xFF800000> : vector<8xf32>
    %128 = vector.multi_reduction <maximumf>, %127, %cst_58 [1] : vector<8x8xf32> to vector<8xf32>
    %129 = vector.shape_cast %128 : vector<8xf32> to vector<8x1xf32>
    %130 = vector.broadcast %129 : vector<8x1xf32> to vector<8x8xf32>
    %131 = arith.subf %127, %130 : vector<8x8xf32>
    %132 = math.exp %131 : vector<8x8xf32>
    %cst_59 = arith.constant dense<0.000000e+00> : vector<8xf32>
    %133 = vector.multi_reduction <add>, %132, %cst_59 [1] : vector<8x8xf32> to vector<8xf32>
    %134 = vector.shape_cast %133 : vector<8xf32> to vector<8x1xf32>
    %135 = tpu.reciprocal %134 {approx = true} : vector<8x1xf32> -> vector<8x1xf32>
    %136 = vector.broadcast %135 : vector<8x1xf32> to vector<8x8xf32>
    %137 = arith.mulf %132, %136 : vector<8x8xf32>
    %138 = arith.truncf %137 : vector<8x8xf32> to vector<8x8xbf16>
    %cst_60 = arith.constant dense<0.000000e+00> : vector<8x32xf32>
    %139 = tpu.matmul %138, %125, %cst_60 {dimension_numbers = #tpu.dot_dimension_numbers<[1], [0], [0], [1], [0, 0, 1, 1], [], []>} : vector<8x8xbf16>, vector<8x32xbf16>, vector<8x32xf32> -> vector<8x32xf32>
    %140 = arith.truncf %139 : vector<8x32xf32> to vector<8x32xbf16>
    %141 = vector.extract_strided_slice %24 {offsets = [96, 0], sizes = [32, 128], strides = [1, 1]} : vector<128x128xbf16> to vector<32x128xbf16>
    %cst_61 = arith.constant dense<0.000000e+00> : vector<8x128xf32>
    %142 = tpu.matmul %140, %141, %cst_61 {dimension_numbers = #tpu.dot_dimension_numbers<[1], [0], [0], [1], [0, 0, 1, 1], [], []>} : vector<8x32xbf16>, vector<32x128xbf16>, vector<8x128xf32> -> vector<8x128xf32>
    %143 = arith.addf %122, %142 : vector<8x128xf32>
    %144 = arith.addf %4, %143 : vector<8x128xf32>
    %145 = vector.broadcast %18 : vector<1x128xf32> to vector<8x128xf32>
    %146 = arith.addf %144, %145 : vector<8x128xf32>
    %cst_62 = arith.constant dense<0.000000e+00> : vector<8xf32>
    %147 = vector.multi_reduction <add>, %146, %cst_62 [1] : vector<8x128xf32> to vector<8xf32>
    %148 = vector.shape_cast %147 : vector<8xf32> to vector<8x1xf32>
    %cst_63 = arith.constant 1.280000e+02 : f32
    %149 = vector.broadcast %cst_63 : f32 to vector<8x1xf32>
    %150 = arith.divf %148, %149 : vector<8x1xf32>
    %151 = vector.broadcast %150 : vector<8x1xf32> to vector<8x128xf32>
    %152 = arith.subf %146, %151 : vector<8x128xf32>
    %153 = arith.mulf %152, %152 : vector<8x128xf32>
    %cst_64 = arith.constant dense<0.000000e+00> : vector<8xf32>
    %154 = vector.multi_reduction <add>, %153, %cst_64 [1] : vector<8x128xf32> to vector<8xf32>
    %155 = vector.shape_cast %154 : vector<8xf32> to vector<8x1xf32>
    %cst_65 = arith.constant 1.280000e+02 : f32
    %156 = vector.broadcast %cst_65 : f32 to vector<8x1xf32>
    %157 = arith.divf %155, %156 : vector<8x1xf32>
    %158 = vector.broadcast %150 : vector<8x1xf32> to vector<8x128xf32>
    %159 = arith.subf %146, %158 : vector<8x128xf32>
    %cst_66 = arith.constant 9.99999974E-6 : f32
    %160 = vector.broadcast %cst_66 : f32 to vector<8x1xf32>
    %161 = arith.addf %157, %160 : vector<8x1xf32>
    %162 = math.rsqrt %161 : vector<8x1xf32>
    %163 = vector.broadcast %162 : vector<8x1xf32> to vector<8x128xf32>
    %164 = arith.mulf %159, %163 : vector<8x128xf32>
    %165 = vector.broadcast %12 : vector<1x128xf32> to vector<8x128xf32>
    %166 = arith.mulf %164, %165 : vector<8x128xf32>
    %167 = vector.broadcast %14 : vector<1x128xf32> to vector<8x128xf32>
    %168 = arith.addf %166, %167 : vector<8x128xf32>
    %169 = arith.truncf %168 : vector<8x128xf32> to vector<8x128xbf16>
    %c0_67 = arith.constant 0 : index
    %c0_68 = arith.constant 0 : index
    %c0_69 = arith.constant 0 : index
    %170 = vector.load %arg12[%c0_67, %c0_68, %c0_69] : memref<1x128x512xbf16, #tpu.memory_space<vmem>>, vector<1x128x512xbf16>
    %171 = vector.shape_cast %170 : vector<1x128x512xbf16> to vector<128x512xbf16>
    %cst_70 = arith.constant dense<0.000000e+00> : vector<8x512xf32>
    %172 = tpu.matmul %169, %171, %cst_70 {dimension_numbers = #tpu.dot_dimension_numbers<[1], [0], [0], [1], [0, 0, 1, 1], [], []>} : vector<8x128xbf16>, vector<128x512xbf16>, vector<8x512xf32> -> vector<8x512xf32>
    %173 = vector.broadcast %20 : vector<1x512xf32> to vector<8x512xf32>
    %174 = arith.addf %172, %173 : vector<8x512xf32>
    %cst_71 = arith.constant 1.702000e+00 : f32
    %175 = vector.broadcast %cst_71 : f32 to vector<8x512xf32>
    %176 = arith.mulf %175, %174 : vector<8x512xf32>
    %177 = arith.negf %176 : vector<8x512xf32>
    %178 = math.exp %177 : vector<8x512xf32>
    %cst_72 = arith.constant 1.000000e+00 : f32
    %179 = vector.broadcast %cst_72 : f32 to vector<8x512xf32>
    %180 = arith.addf %179, %178 : vector<8x512xf32>
    %181 = arith.divf %179, %180 : vector<8x512xf32>
    %182 = arith.mulf %174, %181 : vector<8x512xf32>
    %183 = arith.truncf %182 : vector<8x512xf32> to vector<8x512xbf16>
    %c0_73 = arith.constant 0 : index
    %c0_74 = arith.constant 0 : index
    %c0_75 = arith.constant 0 : index
    %184 = vector.load %arg14[%c0_73, %c0_74, %c0_75] : memref<1x512x128xbf16, #tpu.memory_space<vmem>>, vector<1x512x128xbf16>
    %185 = vector.shape_cast %184 : vector<1x512x128xbf16> to vector<512x128xbf16>
    %cst_76 = arith.constant dense<0.000000e+00> : vector<8x128xf32>
    %186 = tpu.matmul %183, %185, %cst_76 {dimension_numbers = #tpu.dot_dimension_numbers<[1], [0], [0], [1], [0, 0, 1, 1], [], []>} : vector<8x512xbf16>, vector<512x128xbf16>, vector<8x128xf32> -> vector<8x128xf32>
    %187 = arith.addf %146, %186 : vector<8x128xf32>
    %188 = vector.broadcast %22 : vector<1x128xf32> to vector<8x128xf32>
    %189 = arith.addf %187, %188 : vector<8x128xf32>
    %c0_77 = arith.constant 0 : index
    %c0_78 = arith.constant 0 : index
    %c0_79 = arith.constant 0 : index
    %190 = vector.load %arg16[%c0_77, %c0_78, %c0_79] : memref<1x8x128xf32, #tpu.memory_space<vmem>>, vector<1x8x128xf32>
    %191 = vector.shape_cast %190 : vector<1x8x128xf32> to vector<8x128xf32>
    %192 = vector.shape_cast %189 : vector<8x128xf32> to vector<1x8x128xf32>
    tpu.vector_store %arg16[%c0_77, %c0_78, %c0_79], %192 {strides = array<i32>} : memref<1x8x128xf32, #tpu.memory_space<vmem>>, vector<1x8x128xf32>,
    return
  }
  func.func @transform_0(%arg0: i32, %arg1: i32) -> (i32, i32, i32) {
    %c0_i32 = arith.constant 0 : i32
    %c0_i32_0 = arith.constant 0 : i32
    %c0_i32_1 = arith.constant 0 : i32
    return %arg0, %c0_i32, %c0_i32_0 : i32, i32, i32
  }
  func.func @transform_1(%arg0: i32, %arg1: i32) -> (i32, i32, i32) {
    %c0_i32 = arith.constant 0 : i32
    %c0_i32_0 = arith.constant 0 : i32
    %c0_i32_1 = arith.constant 0 : i32
    return %arg0, %c0_i32, %c0_i32_0 : i32, i32, i32
  }
  func.func @transform_2(%arg0: i32, %arg1: i32) -> (i32, i32, i32) {
    %c0_i32 = arith.constant 0 : i32
    %c0_i32_0 = arith.constant 0 : i32
    %c0_i32_1 = arith.constant 0 : i32
    return %arg1, %c0_i32, %c0_i32_0 : i32, i32, i32
  }
  func.func @transform_3(%arg0: i32, %arg1: i32) -> (i32, i32, i32) {
    %c0_i32 = arith.constant 0 : i32
    %c0_i32_0 = arith.constant 0 : i32
    %c0_i32_1 = arith.constant 0 : i32
    return %arg1, %c0_i32, %c0_i32_0 : i32, i32, i32
  }
  func.func @transform_4(%arg0: i32, %arg1: i32) -> (i32, i32, i32) {
    %c0_i32 = arith.constant 0 : i32
    %c0_i32_0 = arith.constant 0 : i32
    %c0_i32_1 = arith.constant 0 : i32
    return %arg1, %c0_i32, %c0_i32_0 : i32, i32, i32
  }
  func.func @transform_5(%arg0: i32, %arg1: i32) -> (i32, i32, i32) {
    %c0_i32 = arith.constant 0 : i32
    %c0_i32_0 = arith.constant 0 : i32
    %c0_i32_1 = arith.constant 0 : i32
    return %arg1, %c0_i32, %c0_i32_0 : i32, i32, i32
  }
  func.func @transform_6(%arg0: i32, %arg1: i32) -> (i32, i32, i32) {
    %c0_i32 = arith.constant 0 : i32
    %c0_i32_0 = arith.constant 0 : i32
    %c0_i32_1 = arith.constant 0 : i32
    return %arg1, %c0_i32, %c0_i32_0 : i32, i32, i32
  }
  func.func @transform_7(%arg0: i32, %arg1: i32) -> (i32, i32, i32) {
    %c0_i32 = arith.constant 0 : i32
    %c0_i32_0 = arith.constant 0 : i32
    %c0_i32_1 = arith.constant 0 : i32
    return %arg1, %c0_i32, %c0_i32_0 : i32, i32, i32
  }
  func.func @transform_8(%arg0: i32, %arg1: i32) -> (i32, i32, i32) {
    %c0_i32 = arith.constant 0 : i32
    %c0_i32_0 = arith.constant 0 : i32
    %c0_i32_1 = arith.constant 0 : i32
    return %arg1, %c0_i32, %c0_i32_0 : i32, i32, i32
  }
  func.func @transform_9(%arg0: i32, %arg1: i32) -> (i32, i32, i32) {
    %c0_i32 = arith.constant 0 : i32
    %c0_i32_0 = arith.constant 0 : i32
    %c0_i32_1 = arith.constant 0 : i32
    return %arg1, %c0_i32, %c0_i32_0 : i32, i32, i32
  }
  func.func @transform_10(%arg0: i32, %arg1: i32) -> (i32, i32, i32) {
    %c0_i32 = arith.constant 0 : i32
    %c0_i32_0 = arith.constant 0 : i32
    %c0_i32_1 = arith.constant 0 : i32
    return %arg1, %c0_i32, %c0_i32_0 : i32, i32, i32
  }
  func.func @transform_11(%arg0: i32, %arg1: i32) -> (i32, i32, i32) {
    %c0_i32 = arith.constant 0 : i32
    %c0_i32_0 = arith.constant 0 : i32
    %c0_i32_1 = arith.constant 0 : i32
    return %arg1, %c0_i32, %c0_i32_0 : i32, i32, i32
  }
  func.func @transform_12(%arg0: i32, %arg1: i32) -> (i32, i32, i32) {
    %c0_i32 = arith.constant 0 : i32
    %c0_i32_0 = arith.constant 0 : i32
    %c0_i32_1 = arith.constant 0 : i32
    return %arg1, %c0_i32, %c0_i32_0 : i32, i32, i32
  }
  func.func @transform_13(%arg0: i32, %arg1: i32) -> (i32, i32, i32) {
    %c0_i32 = arith.constant 0 : i32
    %c0_i32_0 = arith.constant 0 : i32
    %c0_i32_1 = arith.constant 0 : i32
    return %arg1, %c0_i32, %c0_i32_0 : i32, i32, i32
  }
  func.func @transform_14(%arg0: i32, %arg1: i32) -> (i32, i32, i32) {
    %c0_i32 = arith.constant 0 : i32
    %c0_i32_0 = arith.constant 0 : i32
    %c0_i32_1 = arith.constant 0 : i32
    return %arg0, %c0_i32, %c0_i32_0 : i32, i32, i32
  }
}

</mosaic_0001>

<bundles_post_ra>
// kernel: clip_text_forward.3
= control target key start
LH: loop header
LB: loop body
LE: loop exit
PB: predicated region body
PF: predicated region fallthrough
CT: control target
= control target key end

     0   :  { %12 = vsyncpa [#allocation5], 0  ;;  %s502_s0 = inlined_call_operand.vmem [shape: s32[2], index: 0, kind: input, shape index: {}]   ;;  %s503_s1 = inlined_call_operand.vmem [shape: f32[16,128], index: 1, kind: input, shape index: {}]   ;;  %s504_s2 = inlined_call_operand.vmem [shape: f32[1,128], index: 2, kind: input, shape index: {}]   ;;  %s505_s3 = inlined_call_operand.vmem [shape: f32[1,128], index: 3, kind: input, shape index: {}]   ;;  %s506_s4 = inlined_call_operand.vmem [shape: f32[128,128], index: 4, kind: input, shape index: {}]   ;;  %s507_s5 = inlined_call_operand.hbm [shape: f32[16,128], index: 5, kind: output, shape index: {0}]   ;;  %s508_s6 = inlined_call_operand.hbm [shape: f32[2,128], index: 6, kind: output, shape index: {1}]  }
   0x1   :  { %13 = vsyncpa [#allocation4], 0 }
   0x2   :  { %14 = vsyncpa [#allocation8], 0  ;;  %s21_s23 = sshll.u32 %s502_s0, 4  ;;  %s22_s23 = int_to_ptr.vmem [resolvable:$true] %s21_s23 }
   0x3   :  { %s305_s24 = scalar_lea.vmem %s22_s23, 16  ;;  %p310_p1 = scmp.lt.s32.totalorder %s22_s23, %s22_s23 }
   0x4   :  { %p306_p0 = scmp.ne.s32.totalorder %s22_s23, %s305_s24  ;;  %p311_p2 = scmp.lt.s32.totalorder %s305_s24, %s305_s24 }
   0x6   :  { %p312_p3 = por %p311_p2, %p310_p1 }
   0x8   :  { %p313_p4 = pnand %p312_p3, %p306_p0 }
   0xa   :  { %316 = shalt.err (!%p313_p4)
}
   0xb   :  { %s367_s25 = smov [#allocation3]  }
   0xc   :  { %24 = dma.vmem_to_smem %s22_s23, 16, %s367_s25, [#allocation5]  }
   0xd   :  { %361 = dma.done.wait [#allocation5], 16  }
   0xe   :  { %362 = vsyncadd [#allocation5], 4294967280 }
   0xf   :  { %36 = sfence }
  0x10   :  { %v37_v0 = vld [vmem:[%s503_s1] sm:$0xff]  ;;  %v38_v1 = vld [vmem:[%s503_s1 + $0x8] sm:$0xff]  ;;  %v368_v13 = vmov 0.0|0.0   ;;  %v94_v14 = vld [vmem:[%s506_s4 + $0x10] sm:$0xff]  ;;  %vm369_vm0 = vmmov 0   ;;  %v370_v29 = vmov 0.0  }
  0x11   :  { %41 = vadd.xlane.f32.xlu0 %v37_v0  ;;  %v92_v10 = vld [vmem:[%s506_s4] sm:$0xff]  ;;  %v93_v11 = vld [vmem:[%s506_s4 + $0x8] sm:$0xff]  ;;  %269 = vmatprep.subr.bf16.mxu0 %v368_v13  ;;  %v95_v15 = vld [vmem:[%s506_s4 + $0x18] sm:$0xff]  ;;  %s82_s13 = sld [smem:[#allocation3]]  ;;  %s215_s14 = sld [smem:[#allocation3 + $0x1]] }
  0x12   :  { %v270_v12 = vpack.c.bf16 %v93_v11, %v92_v10  ;;  %v273_v16 = vpack.c.bf16 %v95_v15, %v94_v14  ;;  %v96_v17 = vld [vmem:[%s506_s4 + $0x20] sm:$0xff]  ;;  %v97_v18 = vld [vmem:[%s506_s4 + $0x28] sm:$0xff]  ;;  %v98_v20 = vld [vmem:[%s506_s4 + $0x30] sm:$0xff]  ;;  %266 = vmatprep.mubr.msk.f32.mxu0 %vm369_vm0, %v370_v29 }
  0x13   :  { %v276_v19 = vpack.c.bf16 %v97_v18, %v96_v17  ;;  %v99_v21 = vld [vmem:[%s506_s4 + $0x38] sm:$0xff]  ;;  %v100_v23 = vld [vmem:[%s506_s4 + $0x40] sm:$0xff]  ;;  %v101_v24 = vld [vmem:[%s506_s4 + $0x48] sm:$0xff] }
  0x14   :  { %271 = vmatpush3.bf16.msra.mxu0 %v270_v12  ;;  %v279_v22 = vpack.c.bf16 %v99_v21, %v98_v20  ;;  %v282_v25 = vpack.c.bf16 %v101_v24, %v100_v23  ;;  %v102_v26 = vld [vmem:[%s506_s4 + $0x50] sm:$0xff]  ;;  %v103_v27 = vld [vmem:[%s506_s4 + $0x58] sm:$0xff]  ;;  %v104_v30 = vld [vmem:[%s506_s4 + $0x60] sm:$0xff] }
  0x15   :  { %43 = vadd.xlane.f32.xlu0 %v38_v1  ;;  %272 = vmatprep.subr.bf16.mxu0 %v368_v13  ;;  %v285_v28 = vpack.c.bf16 %v103_v27, %v102_v26  ;;  %v105_v31 = vld [vmem:[%s506_s4 + $0x68] sm:$0xff]  ;;  %v106_v33 = vld [vmem:[%s506_s4 + $0x70] sm:$0xff]  ;;  %v107_v34 = vld [vmem:[%s506_s4 + $0x78] sm:$0xff] }
  0x16   :  { %v288_v32 = vpack.c.bf16 %v105_v31, %v104_v30  ;;  %v291_v35 = vpack.c.bf16 %v107_v34, %v106_v33  ;;  %v213_v43 = vld [vmem:[%s504_s2] ss:$0 sm:$0xff]  ;;  %s371_s2 = smov [#allocation6]  }
  0x17   :  { %v214_v45 = vld [vmem:[%s505_s3] ss:$0 sm:$0xff]  ;;  %s83_s15 = scalar_lea.vmem [#allocation6], %s82_s13  ;;  %s211_s16 = scalar_lea.vmem [#allocation6], %s215_s14 }
  0x18   :  { %274 = vmatpush3.bf16.msra.mxu0 %v273_v16  ;;  %s184_s3 = sshll.u32 %s371_s2, 4  ;;  %s185_s3 = int_to_ptr.vmem [resolvable:$true] %s184_s3 }
  0x19   :  { %275 = vmatprep.subr.bf16.mxu0 %v368_v13  ;;  %s317_s17 = scalar_lea.vmem %s185_s3, 256  ;;  %p322_p6 = scmp.lt.s32.totalorder %s185_s3, %s185_s3 }
  0x1a   :  { %p318_p5 = scmp.ne.s32.totalorder %s185_s3, %s317_s17  ;;  %p323_p7 = scmp.lt.s32.totalorder %s317_s17, %s317_s17 }
  0x1c   :  { %277 = vmatpush3.bf16.msra.mxu0 %v276_v19  ;;  %p324_p8 = por %p323_p7, %p322_p6 }
  0x1d   :  { %278 = vmatprep.subr.bf16.mxu0 %v368_v13 }
  0x1e   :  { %p325_p9 = pnand %p324_p8, %p318_p5 }
  0x20   :  { %280 = vmatpush3.bf16.msra.mxu0 %v279_v22 }
  0x21   :  { %281 = vmatprep.subr.bf16.mxu0 %v368_v13 }
  0x24   :  { %283 = vmatpush3.bf16.msra.mxu0 %v282_v25 }
  0x25   :  { %284 = vmatprep.subr.bf16.mxu0 %v368_v13 }
  0x28   :  { %286 = vmatpush3.bf16.msra.mxu0 %v285_v28 }
  0x29   :  { %287 = vmatprep.subr.bf16.mxu0 %v368_v13 }
  0x2c   :  { %289 = vmatpush3.bf16.msra.mxu0 %v288_v32 }
  0x2d   :  { %290 = vmatprep.subr.bf16.mxu0 %v368_v13 }
  0x30   :  { %292 = vmatpush3.bf16.msra.mxu0 %v291_v35 }
  0x9e   :  { %v42_v2 = vpop.xlane.xlu0 %41 }
  0x9f   :  { %v46_v3 = vmul.f32 0.0078125, %v42_v2 }
  0xa1   :  { %v48_v4 = vsub.f32 %v37_v0, %v46_v3 }
  0xa2   :  { %v44_v5 = vpop.xlane.xlu0 %43 }
  0xa3   :  { %v47_v6 = vmul.f32 0.0078125, %v44_v5  ;;  %v50_v7 = vmul.f32 %v48_v4, %v48_v4 }
  0xa5   :  { %v419_v8 = vsub.f32 %v38_v1, %v47_v6  ;;  %52 = vadd.xlane.f32.xlu1 %v50_v7 }
  0xa7   :  { %v51_v9 = vmul.f32 %v419_v8, %v419_v8 }
  0xa9   :  { %54 = vadd.xlane.f32.xlu1 %v51_v9 }
 0x132   :  { %v53_v36 = vpop.xlane.xlu1 %52 }
 0x133   :  { %v56_v37 = vmul.f32 0.0078125, %v53_v36 }
 0x135   :  { %v58_v38 = vadd.f32 1e-05, %v56_v37 }
 0x136   :  { %v55_v39 = vpop.xlane.xlu1 %54 }
 0x137   :  { %301 = vrsqrt.f32 %v58_v38  ;;  %v57_v40 = vmul.f32 0.0078125, %v55_v39 }
 0x139   :  { %v59_v41 = vadd.f32 1e-05, %v57_v40 }
 0x13b   :  { %303 = vrsqrt.f32 %v59_v41 }
 0x141   :  { %v302_v42 = vpop.eup %301 }
 0x142   :  { %v62_v44 = vmul.f32 %v302_v42, %v48_v4 }
 0x144   :  { %v70_v46 = vmul.f32 %v213_v43, %v62_v44 }
 0x145   :  { %v304_v47 = vpop.eup %303 }
 0x146   :  { %v78_v48 = vadd.f32 %v214_v45, %v70_v46  ;;  %v63_v49 = vmul.f32 %v304_v47, %v419_v8 }
 0x148   :  { %80 = vst [vmem:[#allocation6] sm:$0xff] %v78_v48  ;;  %v71_v50 = vmul.f32 %v213_v43, %v63_v49 }
 0x14a   :  { %v79_v51 = vadd.f32 %v214_v45, %v71_v50 }
 0x14c   :  { %81 = vst [vmem:[#allocation6 + $0x8] sm:$0xff] %v79_v51 }
 0x153   :  { %v84_v52 = vld [vmem:[%s83_s15] sm:$0x1]  ;;  %v216_v53 = vld [vmem:[%s211_s16 + $0x8] sm:$0x1] }
 0x154   :  { %85 = vst [vmem:[#allocation2] sm:$0x1] %v84_v52  ;;  %90 = vst [vmem:[#allocation2 + $0x1] sm:$0x1] %v216_v53 }
 0x15b   :  { %v91_v54 = vld [vmem:[#allocation2] sm:$0x3] }
 0x15c   :  { %267 = vmatmul.mubr.f32.vlgmr.msra.gmra.mrb[0].mxu0 %v91_v54 }
 0x15d   :  { %328 = shalt.err (!%p325_p9)
}
 0x15e   :  { %s329_s20 = scalar_lea.hbm %s507_s5, 256 }
 0x15f   :  { %p330_p10 = scmp.ne.s32.totalorder %s507_s5, %s329_s20  ;;  %p333_p11 = scmp.lt.u32.totalorder %s329_s20, %s507_s5 }
 0x161   :  { %p335_p12 = pnand %p333_p11, %p330_p10 }
 0x163   :  { %338 = shalt.err (!%p335_p12)
}
 0x164   :  { %s372_s25 = smov 128   ;;  %s373_s26 = smov 8  }
 0x165   :  { %190 = dma.vmem_to_hbm [thread:$0]  %s185_s3, 256, %s507_s5, [#allocation4], %s372_s25, %s372_s25, %s373_s26  }
 0x166   :  { %s374_s0 = smov [#allocation7]  }
 0x167   :  { %s197_s29 = sshll.u32 %s374_s0, 4  ;;  %s198_s29 = int_to_ptr.vmem [resolvable:$true] %s197_s29 }
 0x168   :  { %s339_s30 = scalar_lea.vmem %s198_s29, 32  ;;  %p344_p0 = scmp.lt.s32.totalorder %s198_s29, %s198_s29 }
 0x169   :  { %p340_p13 = scmp.ne.s32.totalorder %s198_s29, %s339_s30  ;;  %p345_p1 = scmp.lt.s32.totalorder %s339_s30, %s339_s30 }
 0x16b   :  { %p346_p2 = por %p345_p1, %p344_p0 }
 0x16d   :  { %p347_p3 = pnand %p346_p2, %p340_p13 }
 0x22f   :  { %v174_v55 = vpop.f32.mrb[0].mxu0 }
 0x230   :  { %178 = vst [vmem:[#allocation7] sm:$0x3] %v174_v55  ;;  %v268_v56 = vpop.f32.mrb[1].mxu0 }
 0x231   :  { %350 = shalt.err (!%p347_p3)
}
 0x232   :  { %s351_s8 = scalar_lea.hbm %s508_s6, 32 }
 0x233   :  { %p352_p4 = scmp.ne.s32.totalorder %s508_s6, %s351_s8  ;;  %p355_p5 = scmp.lt.u32.totalorder %s351_s8, %s508_s6 }
 0x235   :  { %p357_p6 = pnand %p355_p5, %p352_p4 }
 0x237   :  { %360 = shalt.err (!%p357_p6)
}
 0x238   :  { %200 = dma.vmem_to_hbm [thread:$0]  %s198_s29, 32, %s508_s6, [#allocation8]  }
 0x239   :  { %363 = dma.done.wait [#allocation4], 256  }
 0x23a   :  { %364 = vsyncadd [#allocation4], 4294967040 }
 0x23b   :  { %365 = dma.done.wait [#allocation8], 32  }
 0x23c   :  { %366 = vsyncadd [#allocation8], 4294967264 }
 0x23d   :  { %207 = vsyncpa [#allocation4], 1 }
 0x23e   :  { %208 = vsyncpa [#allocation8], 1 }
 0x23f   :  { %209 = vsyncpa [#allocation5], 1 }

// kernel: clip_text_forward.2
= control target key start
LH: loop header
LB: loop body
LE: loop exit
PB: predicated region body
PF: predicated region fallthrough
CT: control target
= control target key end

     0   :  { %s4086_s0 = inlined_call_operand.vmem [shape: f32[2,8,128], index: 0, kind: input, shape index: {}]   ;;  %s4087_s1 = inlined_call_operand.vmem [shape: f32[2,8,8], index: 1, kind: input, shape index: {}]   ;;  %s4088_s2 = inlined_call_operand.vmem [shape: f32[2,1,128], index: 2, kind: input, shape index: {}]   ;;  %s4089_s3 = inlined_call_operand.vmem [shape: f32[2,1,128], index: 3, kind: input, shape index: {}]   ;;  %s4090_s4 = inlined_call_operand.hbm [shape: bf16[2,128,384], index: 4, kind: input, shape index: {}]   ;;  %s4091_s5 = inlined_call_operand.vmem [shape: f32[2,1,384], index: 5, kind: input, shape index: {}]   ;;  %s4092_s6 = inlined_call_operand.vmem [shape: bf16[2,128,128], index: 6, kind: input, shape index: {}]   ;;  %s4093_s7 = inlined_call_operand.vmem [shape: f32[2,1,128], index: 7, kind: input, shape index: {}]   ;;  %s4094_s8 = inlined_call_operand.vmem [shape: f32[2,1,128], index: 8, kind: input, shape index: {}]   ;;  %s4095_s9 = inlined_call_operand.vmem [shape: f32[2,1,128], index: 9, kind: input, shape index: {}]   ;;  %s4096_s10 = inlined_call_operand.hbm [shape: bf16[2,128,512], index: 10, kind: input, shape index: {}]   ;;  %s4097_s11 = inlined_call_operand.vmem [shape: f32[2,1,512], index: 11, kind: input, shape index: {}]   ;;  %s4098_s12 = inlined_call_operand.hbm [shape: bf16[2,512,128], index: 12, kind: input, shape index: {}]   ;;  %s4099_s13 = inlined_call_operand.vmem [shape: f32[2,1,128], index: 13, kind: input, shape index: {}]   ;;  %s4100_s14 = inlined_call_operand.vmem [shape: f32[2,8,128], index: 14, kind: output, shape index: {}]  }
   0x1   :  { %4113 = sst [smem:[#allocation19_spill]] %s4086_s0 }
   0x2   :  { %4114 = sst [smem:[#allocation20_spill]] %s4090_s4 }
   0x3   :  { %4115 = sst [smem:[#allocation21_spill]] %s4091_s5 }
   0x4   :  { %4116 = sst [smem:[#allocation22_spill]] %s4092_s6 }
   0x5   :  { %4117 = sst [smem:[#allocation23_spill]] %s4093_s7 }
   0x6   :  { %4118 = sst [smem:[#allocation24_spill]] %s4094_s8 }
   0x7   :  { %4119 = sst [smem:[#allocation25_spill]] %s4095_s9 }
   0x8   :  { %4120 = sst [smem:[#allocation26_spill]] %s4096_s10 }
   0x9   :  { %4121 = sst [smem:[#allocation27_spill]] %s4097_s11 }
   0xa   :  { %4122 = sst [smem:[#allocation28_spill]] %s4098_s12 }
   0xb   :  { %4123 = sst [smem:[#allocation29_spill]] %s4099_s13 }
   0xc   :  { %4124 = sst [smem:[#allocation30_spill]] %s4100_s14 }
   0xd   :  { %19 = vsyncpa [#allocation3], 0 }
   0xe   :  { %21 = vsyncpa [#allocation3 + $0x1], 0 }
   0xf   :  { %22 = vsyncpa [#allocation5], 0 }
  0x10   :  { %24 = vsyncpa [#allocation5 + $0x1], 0  ;;  %s3506_s29 = smov 0   ;;  %s3508_s30 = smov 0  }
  0x11   :  { %s3510_s15 = smov 0   ;;  %s3512_s16 = smov 0  }
  0x12   :  { %s3514_s17 = smov 0   ;;  %s3516_s18 = smov 0  }
  0x13   :  { %s3518_s19 = smov 0   ;;  %s3520_s20 = smov 0  }
  0x14 LB: > { %4125 = sst [smem:[#allocation9_spill]] %s3390_s30  ;;  %s4102_s21 = sadd.s32 4294967295, %s3414_s20   ;;  %s3414_s20 = sphi %s3520_s20, %s30_s20   ;;  %s3410_s19 = sphi %s3518_s19, %s4173_s19   ;;  %s3406_s18 = sphi %s3516_s18, %s4172_s18   ;;  %s3402_s17 = sphi %s3514_s17, %s4171_s17   ;;  %s3398_s16 = sphi %s3512_s16, %s4170_s16   ;;  %s3394_s15 = sphi %s3510_s15, %s4169_s15   ;;  %s3390_s30 = sphi %s3508_s30, %s4168_s30   ;;  %s3386_s29 = sphi %s3506_s29, %s4167_s29  }
  0x15   : > { %4126 = sst [smem:[#allocation10_spill]] %s3394_s15  ;;  %s39_s22 = sadd.s32 1, %s3406_s18 }
  0x16   : > { %4127 = sst [smem:[#allocation11_spill]] %s3406_s18  ;;  %p40_p0 = scmp.ge.s32.totalorder %s39_s22, 2 }
  0x17   : > { %4128 = sst [smem:[#allocation12_spill]] %s3410_s19  ;;  %s42_s23 = sadd.s32 1, %s3410_s19 }
  0x18   : > { %4129 = sst [smem:[#allocation13_spill]] %s3414_s20  ;;  %s153_s24 = sadd.s32 1, %s3394_s15 }
  0x19   : > { %p160_p1 = scmp.ne.s32.totalorder %s3394_s15, %s3390_s30  ;;  %s4175_s22 = smov (%p40_p0, %s39_s22), 0 }
  0x1a   : > { %4130 = sst [smem:[#allocation14_spill]] %s4175_s22  ;;  %s4177_s23 = smov (!%p40_p0, %s42_s23), %s3410_s19 }
  0x1b   : > { %s150_s25 = ssub.s32 %s3406_s18, %s4175_s22  ;;  %p161_p2 = scmp.eq.s32.totalorder %s3414_s20, 0 }
  0x1c   : > { %p44_p3 = scmp.ge.s32.totalorder %s4177_s23, 2  ;;  %p151_p4 = scmp.eq.s32.totalorder %s150_s25, 0 }
  0x1d   : > { %p162_p5 = por %p161_p2, %p160_p1  ;;  %p166_p6 = scmp.ne.s32.totalorder %s3390_s30, %s3386_s29 }
  0x1e   : > { %s4179_s23 = smov (%p44_p3, %s4177_s23), 0  ;;  %p167_p7 = scmp.eq.s32.totalorder %s4102_s21, 0 }
  0x1f   : > { %4131 = sst [smem:[#allocation15_spill]] %s4179_s23  ;;  %p3021_p8 = scmp.lt.s32.totalorder %s3414_s20, 4 }
  0x20   : > { %s3560_s26 = scalar_select %p151_p4, %s3394_s15, %s153_s24  }
  0x21   : > { %s3566_s27 = sand.u32 1, %s3394_s15   ;;  %p3568_p9 = por %p167_p7, %p166_p6 }
  0x22   : > { %4132 = sst [smem:[#allocation16_spill]] %s3560_s26  ;;  %s530_s22 = sand.u32 1, %s3414_s20  }
  0x23   : > { %s4133_s28 = scalar_select %p3568_p9, 1, 0 }
  0x24   : > { %p3573_p10 = pnand %p3021_p8, %p162_p5  ;;  %s4105_s29 = sshll.u32 %s3566_s27, 8 }
  0x25   : > { %s4106_s24 = sshll.u32 %s3406_s18, 12  ;;  %s4135_s10 = sld [smem:[#allocation26_spill]] }
  0x26   : > { %s534_s26 = scalar_lea.vmem [#allocation4], %s4105_s29  ;;  %s3590_s14 = scalar_lea.sflag [#allocation5], %s530_s22 }
  0x27   : > { %s541_s15 = sshll.u32 %s534_s26, 4  ;;  %p3596_p12 = pneg %p3573_p10  ;;  %s3588_s15 = int_to_ptr.vmem [resolvable:$true] %s541_s15 }
  0x2b   : > { %s3584_s19 = scalar_lea.hbm %s4135_s10, %s4106_s24  ;;  %s3259_s29 = scalar_lea.hbm %s4135_s10, 8192 }
  0x2c   : > { %s3254_s13 = scalar_lea.hbm %s3584_s19, 4096  ;;  %p3260_p1 = scmp.lt.u32.totalorder %s3584_s19, %s4135_s10 }
  0x2d   : > { %p3255_p11 = scmp.ne.s32.totalorder %s3584_s19, %s3254_s13  ;;  %p3261_p2 = scmp.lt.u32.totalorder %s3259_s29, %s3254_s13 }
  0x2e   : > { %p3263_p4 = scmp.lt.u32.totalorder %s3254_s13, %s3584_s19 }
  0x2f   : > { %p3257_p13 = pnand %p3596_p12, %p3255_p11  ;;  %p3262_p3 = por %p3261_p2, %p3260_p1 }
  0x31   : > { %p3258_p0 = pneg %p3257_p13  ;;  %p3264_p5 = por %p3263_p4, %p3262_p3 }
  0x33   : > { %p3265_p6 = pnand %p3264_p5, %p3258_p0 }
  0x35   : > { %3268 = shalt.err (!%p3265_p6)
}
  0x36   : > { %s3269_s22 = scalar_lea.vmem %s3588_s15, 4096  ;;  %s3416_s21 = smov [#allocation4]  }
  0x37   : > { %p3270_p7 = scmp.ne.s32.totalorder %s3588_s15, %s3269_s22  ;;  %s3274_s23 = sshll.u32 %s3416_s21, 4  ;;  %s3275_s23 = int_to_ptr.vmem [resolvable:$false] %s3274_s23 }
  0x38   : > { %s3276_s24 = scalar_lea.vmem %s3275_s23, 8192  ;;  %p3277_p13 = scmp.lt.s32.totalorder %s3588_s15, %s3275_s23 }
  0x39   : > { %p3272_p8 = pnand %p3270_p7, %p3596_p12  ;;  %p3278_p9 = scmp.lt.s32.totalorder %s3276_s24, %s3269_s22 }
  0x3b   : > { %p3273_p11 = pneg %p3272_p8  ;;  %p3279_p1 = por %p3278_p9, %p3277_p13 }
  0x3d   : > { %p3280_p2 = pnand %p3279_p1, %p3273_p11 }
  0x3f   : > { %3283 = shalt.err (!%p3280_p2)
}
  0x40   : > { %s3417_s13 = smov 256   ;;  %s3418_s29 = smov 16  }
  0x41   : > { %3017 = dma.hbm_to_vmem [thread:$0]  (!%p3573_p10), %s3584_s19, 4096, %s3588_s15, %s3590_s14, %s3417_s13, %s3417_s13, %s3418_s29  }
  0x42   : > { %s4137_s26 = sshll.u32 %s3406_s18, 12  ;;  %s4138_s12 = sld [smem:[#allocation28_spill]] }
  0x43   : > { %s4139_s24 = sshll.u32 %s3566_s27, 8  ;;  %p2687_p9 = scmp.ge.s32.totalorder %s3414_s20, 1 }
  0x44   : > { %s562_s10 = scalar_lea.vmem [#allocation6], %s4139_s24  ;;  %p583_p0 = scmp.lt.s32.totalorder %s3414_s20, 5 }
  0x45   : > { %s569_s9 = sshll.u32 %s562_s10, 4  ;;  %s3001_s5 = smul.u32 192, %s3566_s27  ;;  %s3629_s9 = int_to_ptr.vmem [resolvable:$true] %s569_s9 }
  0x46   : > { %p3633_p3 = pnand %p2687_p9, %p583_p0  ;;  %s3002_s15 = smul.u32 3072, %s3406_s18 }
  0x47   : > { %s4141_s4 = sld [smem:[#allocation20_spill]]  ;;  %s480_s10 = scalar_lea.vmem [#allocation2], %s3001_s5 }
  0x48   : > { %s3625_s23 = scalar_lea.hbm %s4138_s12, %s4137_s26  ;;  %s487_s26 = sshll.u32 %s480_s10, 4  ;;  %s3644_s26 = int_to_ptr.vmem [resolvable:$true] %s487_s26 }
  0x49   : > { %s4140_s8 = scalar_select %p3633_p3, 1, 0 }
  0x4a   : > { %s477_s22 = scalar_lea.sflag [#allocation3], %s3566_s27 }
  0x4d   : > { %s3642_s29 = scalar_lea.hbm %s4141_s4, %s3002_s15  ;;  %s3289_s19 = scalar_lea.hbm %s4141_s4, 6144 }
  0x4e   : > { %s3284_s21 = scalar_lea.hbm %s3642_s29, 3072  ;;  %p3290_p7 = scmp.lt.u32.totalorder %s3642_s29, %s4141_s4 }
  0x4f   : > { %p3285_p4 = scmp.ne.s32.totalorder %s3642_s29, %s3284_s21  ;;  %p3291_p8 = scmp.lt.u32.totalorder %s3289_s19, %s3284_s21 }
  0x50   : > { %p3293_p13 = scmp.lt.u32.totalorder %s3284_s21, %s3642_s29 }
  0x51   : > { %p3287_p5 = pnand %p3285_p4, %p3596_p12  ;;  %p3292_p11 = por %p3291_p8, %p3290_p7 }
  0x53   : > { %p3288_p6 = pneg %p3287_p5  ;;  %p3294_p1 = por %p3293_p13, %p3292_p11 }
  0x55   : > { %p3295_p2 = pnand %p3294_p1, %p3288_p6 }
  0x57   : > { %3298 = shalt.err (!%p3295_p2)
}
  0x58   : > { %s3299_s5 = scalar_lea.vmem %s3644_s26, 3072  ;;  %s3419_s18 = smov [#allocation2]  }
  0x59   : > { %p3300_p9 = scmp.ne.s32.totalorder %s3644_s26, %s3299_s5  ;;  %s3304_s10 = sshll.u32 %s3419_s18, 4  ;;  %s3305_s10 = int_to_ptr.vmem [resolvable:$false] %s3304_s10 }
  0x5a   : > { %s3306_s24 = scalar_lea.vmem %s3305_s10, 6144  ;;  %p3307_p5 = scmp.lt.s32.totalorder %s3644_s26, %s3305_s10 }
  0x5b   : > { %p3302_p0 = pnand %p3300_p9, %p3596_p12  ;;  %p3308_p3 = scmp.lt.s32.totalorder %s3306_s24, %s3299_s5 }
  0x5d   : > { %p3303_p4 = pneg %p3302_p0  ;;  %p3309_p7 = por %p3308_p3, %p3307_p5 }
  0x5f   : > { %p3310_p8 = pnand %p3309_p7, %p3303_p4 }
  0x61   : > { %3313 = shalt.err (!%p3310_p8)
}
  0x62   : > { %s3420_s21 = smov 192   ;;  %s3421_s19 = smov 12  }
  0x63   : > { %3014 = dma.hbm_to_vmem [thread:$0]  (!%p3573_p10), %s3642_s29, 3072, %s3644_s26, %s477_s22, %s3420_s21, %s3420_s21, %s3421_s19  }
  0x64   : > { %s3314_s15 = scalar_lea.hbm %s3625_s23, 4096  ;;  %s3319_s18 = scalar_lea.hbm %s4138_s12, 8192 }
  0x65   : > { %p3315_p6 = scmp.ne.s32.totalorder %s3625_s23, %s3314_s15  ;;  %p3320_p13 = scmp.lt.u32.totalorder %s3625_s23, %s4138_s12 }
  0x66   : > { %p3321_p1 = scmp.lt.u32.totalorder %s3319_s18, %s3314_s15  ;;  %p3323_p9 = scmp.lt.u32.totalorder %s3314_s15, %s3625_s23 }
  0x67   : > { %p3317_p3 = pnand %p3315_p6, %p3596_p12 }
  0x68   : > { %p3322_p2 = por %p3321_p1, %p3320_p13 }
  0x69   : > { %p3318_p11 = pneg %p3317_p3 }
  0x6a   : > { %p3324_p0 = por %p3323_p9, %p3322_p2 }
  0x6c   : > { %p3325_p4 = pnand %p3324_p0, %p3318_p11 }
  0x6e   : > { %3328 = shalt.err (!%p3325_p4)
}
  0x6f   : > { %s3329_s27 = scalar_lea.vmem %s3629_s9, 4096  ;;  %s3422_s29 = smov [#allocation6]  }
  0x70   : > { %p3330_p5 = scmp.ne.s32.totalorder %s3629_s9, %s3329_s27  ;;  %s3334_s26 = sshll.u32 %s3422_s29, 4  ;;  %s3335_s26 = int_to_ptr.vmem [resolvable:$false] %s3334_s26 }
  0x71   : > { %s3336_s22 = scalar_lea.vmem %s3335_s26, 8192  ;;  %p3337_p6 = scmp.lt.s32.totalorder %s3629_s9, %s3335_s26 }
  0x72   : > { %p3332_p7 = pnand %p3330_p5, %p3596_p12  ;;  %p3338_p3 = scmp.lt.s32.totalorder %s3336_s22, %s3329_s27 }
  0x74   : > { %p3333_p8 = pneg %p3332_p7  ;;  %p3339_p13 = por %p3338_p3, %p3337_p6 }
  0x76   : > { %p3340_p1 = pnand %p3339_p13, %p3333_p8 }
  0x78   : > { %3343 = shalt.err (!%p3340_p1)
}
  0x79   : > { %s3423_s21 = smov 64   ;;  %s3424_s19 = smov 4  }
  0x7a   : > { %3020 = dma.hbm_to_vmem [thread:$0]  (!%p3573_p10), %s3625_s23, 4096, %s3629_s9, %s3590_s14, %s3423_s21, %s3423_s21, %s3424_s19  }
  0x7b   : > { %p4142_p12 = scmp.ne.s32.totalorder %s4140_s8, 0 }
  0x7d   : > { %587 = sbr.rel (%p4142_p12) target bundleno = 3856 (0xf10), region = 76 }
  0x84   : > { %s3695_s11 = sand.u32 1, %s3390_s30   ;;  %p4143_p11 = scmp.ne.s32.totalorder %s4133_s28, 0 }
  0x85   : > { %s3003_s15 = smul.u32 192, %s3695_s11  ;;  %s590_s13 = scalar_lea.sflag [#allocation3], %s3695_s11 }
  0x87   : > { %s3699_s5 = scalar_lea.vmem [#allocation2], %s3003_s15 }
  0x88   : > { %3377 = dma.done.wait (%p4143_p11), %s590_s13, 3072  }
  0x89   : > { %3379 = vsyncadd (%p4143_p11), %s590_s13, 4294964224  ;;  %s4144_s9 = sadd.s32 4294967295, %s3414_s20   ;;  %s2688_s14 = sshll.u32 %s3695_s11, 8 }
  0x8a   : > { %s598_s8 = sand.u32 1, %s4144_s9   ;;  %s3708_s23 = scalar_lea.vmem [#allocation4], %s2688_s14 }
  0x8b   : > { %s599_s25 = scalar_lea.sflag [#allocation5], %s598_s8  ;;  %4145 = sst [smem:[#allocation17_spill]] %s3708_s23 }
  0x8c   : > { %3381 = dma.done.wait (%p4143_p11), %s599_s25, 8192  }
  0x8d   : > { %3383 = vsyncadd (%p4143_p11), %s599_s25, 4294959104  ;;  %p704_p10 = scmp.lt.s32.totalorder %s3402_s17, 1  ;;  %p712_p2 = scmp.lt.s32.totalorder %s3398_s16, 1 }
  0x8e   : > { %s4146_s0 = sld [smem:[#allocation19_spill]]  ;;  %s4147_s6 = sld [smem:[#allocation22_spill]] }
  0x8f   : > { %s4181_s17 = smov (!%p704_p10, %s3402_s17), 1  ;;  %s4150_s12 = sld [smem:[#allocation21_spill]] }
  0x90   : > { %s3718_s18 = scalar_select %p712_p2, %s3398_s16, 1 }
  0x91   : > { %s3720_s28 = sshll.u32 %s4181_s17, 3  ;;  %s4151_s15 = sld [smem:[#allocation24_spill]] }
  0x92   : > { %s3004_s9 = smul.u32 3, %s3718_s18  ;;  %s2819_s8 = sshll.u32 %s3718_s18, 6 }
  0x93   : > { %s4152_s20 = sld [smem:[#allocation25_spill]]  ;;  %s2694_s4 = sshll.u32 %s3718_s18, 2 }
  0x94   : > { %s707_s27 = scalar_lea.vmem %s4146_s0, %s3720_s28  ;;  %s3743_s10 = scalar_lea.vmem %s4147_s6, %s2819_s8 }
  0x95   : > { %4148 = sst [smem:[#allocation18_spill]] %s3743_s10  ;;  %s3752_s21 = scalar_lea.vmem %s4150_s12, %s3004_s9 }
  0x96   : > { %s4153_s6 = sld [smem:[#allocation27_spill]]  ;;  %s4154_s29 = sld [smem:[#allocation29_spill]] }
  0x97   : > { %s732_s13 = scalar_lea.vmem %s4151_s15, %s3718_s18  ;;  %s4155_s26 = sld [smem:[#allocation30_spill]] }
  0x98   : > { %s3778_s11 = scalar_lea.vmem [#allocation6], %s2688_s14  ;;  %p2696_p9 = scmp.ne.s32.totalorder %s3398_s16, 0 }
  0x99   : > { %s735_s23 = scalar_lea.vmem %s4152_s20, %s3718_s18  ;;  %v752_v0 = vld [vmem:[%s707_s27] sm:$0xff] (!%p2696_p9) }
  0x9a   : > { %751 = sbr.rel (%p2696_p9) target bundleno = 161 (0xa1), region = 92 }
  0x9c   : > { %s3766_s10 = scalar_lea.vmem %s4153_s6, %s2694_s4  ;;  %s742_s22 = scalar_lea.vmem %s4154_s29, %s3718_s18 }
  0x9d   : > { %s3776_s7 = scalar_lea.vmem %s4155_s26, %s3720_s28 }
  0x9e   : > { %753 = vst [vmem:[%s3776_s7] sm:$0xff] (!%p2696_p9), %v752_v0 }
  0xa1 PF: > { %v3098_v2 = vld [vmem:[%s3699_s5 + $0x4] ss:$12 sps:$4 sm:$0xff]   ;;  %v3100_v3 = vld [vmem:[%s3699_s5] ss:$12 sps:$4 sm:$0xff]   ;;  %v3425_v4 = vmov 0.0   ;;  %v3426_v26 = vmov 0   ;;  %s4156_s16 = scalar_lea.vmem %s4088_s2, %s3718_s18  ;;  %s4157_s14 = scalar_lea.vmem %s4089_s3, %s3718_s18  ;;  %v840_v42 = vlaneseq }
  0xa2   : > { %2901 = vmatprep.subr.bf16.mxu1 %v3425_v4  ;;  %v3101_v5 = vld [vmem:[%s3699_s5 + $0x8] ss:$12 sps:$4 sm:$0xff]   ;;  %v3104_v7 = vld [vmem:[%s3699_s5 + $0x18] ss:$12 sps:$4 sm:$0xff]   ;;  %983 = vmatprep.subr.bf16.mxu0 %v3098_v2  ;;  %v3105_v8 = vld [vmem:[%s3699_s5 + $0x20] ss:$12 sps:$4 sm:$0xff]  }
  0xa3   : > { %v3102_v6 = vld [vmem:[%s3699_s5 + $0x1c] ss:$12 sps:$4 sm:$0xff]   ;;  %v3106_v9 = vld [vmem:[%s3699_s5 + $0x34] ss:$12 sps:$4 sm:$0xff]   ;;  %984 = vmatpush1.bf16.msra.mxu0 %v3100_v3  ;;  %2902 = vmatpush3.bf16.msra.mxu1 %v3101_v5  ;;  %v3109_v15 = vld [vmem:[%s3699_s5 + $0x38] ss:$12 sps:$4 sm:$0xff]  }
  0xa4   : > { %985 = vmatprep.subr.bf16.mxu0 %v3102_v6  ;;  %2903 = vmatprep.subr.bf16.mxu1 %v3425_v4  ;;  %v3108_v14 = vld [vmem:[%s3699_s5 + $0x30] ss:$12 sps:$4 sm:$0xff]   ;;  %v3110_v16 = vld [vmem:[%s3699_s5 + $0x4c] ss:$12 sps:$4 sm:$0xff]   ;;  %v3112_v17 = vld [vmem:[%s3699_s5 + $0x48] ss:$12 sps:$4 sm:$0xff]  }
  0xa5   : > { %v3783_v1 = vld [vmem:[%s3776_s7] sm:$0xff]  ;;  %v3113_v18 = vld [vmem:[%s3699_s5 + $0x50] ss:$12 sps:$4 sm:$0xff]   ;;  %v3117_v21 = vld [vmem:[%s3699_s5 + $0x68] ss:$12 sps:$4 sm:$0xff]   ;;  %1015 = vmatprep.mubr.bf16.mxu0 %v3426_v26  ;;  %vm3427_vm0 = vmmov 0  }
  0xa6   : > { %780 = vadd.xlane.f32.xlu0 %v3783_v1  ;;  %v3114_v19 = vld [vmem:[%s3699_s5 + $0x64] ss:$12 sps:$4 sm:$0xff]   ;;  %v3116_v20 = vld [vmem:[%s3699_s5 + $0x60] ss:$12 sps:$4 sm:$0xff]   ;;  %v3118_v22 = vld [vmem:[%s3699_s5 + $0x7c] ss:$12 sps:$4 sm:$0xff]   ;;  %2917 = vmatprep.mubr.msk.bf16.mxu1 %vm3427_vm0, %v3425_v4 }
  0xa7   : > { %986 = vmatpush1.bf16.msra.mxu0 %v3104_v7  ;;  %2904 = vmatpush3.bf16.msra.mxu1 %v3105_v8  ;;  %v3120_v23 = vld [vmem:[%s3699_s5 + $0x78] ss:$12 sps:$4 sm:$0xff]   ;;  %v3121_v24 = vld [vmem:[%s3699_s5 + $0x80] ss:$12 sps:$4 sm:$0xff]   ;;  %v3124_v27 = vld [vmem:[%s3699_s5 + $0x90] ss:$12 sps:$4 sm:$0xff]  }
  0xa8   : > { %987 = vmatprep.subr.bf16.mxu0 %v3106_v9  ;;  %2905 = vmatprep.subr.bf16.mxu1 %v3425_v4  ;;  %v3122_v25 = vld [vmem:[%s3699_s5 + $0x94] ss:$12 sps:$4 sm:$0xff]   ;;  %v3125_v28 = vld [vmem:[%s3699_s5 + $0x98] ss:$12 sps:$4 sm:$0xff]   ;;  %v3129_v31 = vld [vmem:[%s3699_s5 + $0xb0] ss:$12 sps:$4 sm:$0xff]  }
  0xa9   : > { %v3126_v29 = vld [vmem:[%s3699_s5 + $0xac] ss:$12 sps:$4 sm:$0xff]   ;;  %v3128_v30 = vld [vmem:[%s3699_s5 + $0xa8] ss:$12 sps:$4 sm:$0xff]   ;;  %v2697_v36 = vld [vmem:[%s4156_s16] ss:$0 sm:$0xff] }
  0xaa   : > { %v2698_v38 = vld [vmem:[%s4157_s14] ss:$0 sm:$0xff]  ;;  %v3838_v43 = vshrl.u32 %v840_v42, 7  ;;  %vm1130_vm1 = vcmask 1043456   ;;  %vm1067_vm2 = vcmask 261120   ;;  %s3428_s27 = smov 96  }
  0xab   : > { %988 = vmatpush1.bf16.msra.mxu0 %v3108_v14  ;;  %2906 = vmatpush3.bf16.msra.mxu1 %v3109_v15  ;;  %v760_v45 = vld [vmem:[%s3752_s21] sm:$0x7]  ;;  %s4158_s21 = scalar_lea.vmem %s4087_s1, %s3720_s28  ;;  %vm1114_vm3 = vcmask 64512   ;;  %s3429_s28 = smov 64  }
  0xac   : > { %2907 = vmatprep.subr.bf16.mxu1 %v3425_v4  ;;  %989 = vmatprep.subr.bf16.mxu0 %v3110_v16  ;;  %v850_v44 = vsub.s32 2, %v3838_v43  ;;  %v846_v46 = vsub.s32 1, %v3838_v43  ;;  %v842_v47 = vsub.s32 0, %v3838_v43  ;;  %v3880_v8 = vld [vmem:[%s4158_s21] sm:$0xff]  ;;  %s4159_s19 = sld [smem:[#allocation18_spill]]  ;;  %s3430_s15 = smov 32  }
  0xad   : > { %s4160_s4 = sld [smem:[#allocation17_spill]] }
  0xae   : > { %v851_v48 = vrot.slane %v760_v45, %v850_v44  ;;  %v847_v49 = vrot.slane %v760_v45, %v846_v46  ;;  %v843_v50 = vrot.slane %v760_v45, %v842_v47  ;;  %s4161_s0 = sld [smem:[#allocation23_spill]] }
  0xaf   : > { %990 = vmatpush1.bf16.msra.mxu0 %v3112_v17  ;;  %2908 = vmatpush3.bf16.msra.mxu1 %v3113_v18 }
  0xb0   : > { %2909 = vmatprep.subr.bf16.mxu1 %v3425_v4  ;;  %991 = vmatprep.subr.bf16.mxu0 %v3114_v19 }
  0xb2   : > { %v3130_v45 = vld [vmem:[%s4159_s19] sm:$0xff]  }
  0xb3   : > { %992 = vmatpush1.bf16.msra.mxu0 %v3116_v20  ;;  %2910 = vmatpush3.bf16.msra.mxu1 %v3117_v21 }
  0xb4   : > { %993 = vmatprep.subr.bf16.mxu0 %v3118_v22  ;;  %2911 = vmatprep.subr.bf16.mxu1 %v3425_v4  ;;  %s4162_s24 = scalar_lea.vmem %s4161_s0, %s3718_s18 }
  0xb7   : > { %994 = vmatpush1.bf16.msra.mxu0 %v3120_v23  ;;  %2912 = vmatpush3.bf16.msra.mxu1 %v3121_v24 }
  0xb8   : > { %995 = vmatprep.subr.bf16.mxu0 %v3122_v25  ;;  %2913 = vmatprep.subr.bf16.mxu1 %v3425_v4 }
  0xbb   : > { %996 = vmatpush1.bf16.msra.mxu0 %v3124_v27  ;;  %2914 = vmatpush3.bf16.msra.mxu1 %v3125_v28 }
  0xbc   : > { %997 = vmatprep.subr.bf16.mxu0 %v3126_v29  ;;  %2915 = vmatprep.subr.bf16.mxu1 %v3425_v4 }
  0xbf   : > { %998 = vmatpush1.bf16.msra.mxu0 %v3128_v30  ;;  %2916 = vmatpush3.bf16.msra.mxu1 %v3129_v31 }
  0xc0   : > { %2927 = vmatprep.subr.bf16.mxu1 %v3425_v4  ;;  %2921 = vmatprep.subr.bf16.mxu0 %v3425_v4 }
 0x133   : > { %v781_v10 = vpop.xlane.xlu0 %780 }
 0x134   : > { %v783_v11 = vmul.f32 0.0078125, %v781_v10 }
 0x136   : > { %v784_v12 = vsub.f32 %v3783_v1, %v783_v11 }
 0x138   : > { %v785_v13 = vmul.f32 %v784_v12, %v784_v12 }
 0x13a   : > { %786 = vadd.xlane.f32.xlu0 %v785_v13 }
 0x1c7   : > { %v787_v32 = vpop.xlane.xlu0 %786 }
 0x1c8   : > { %v788_v33 = vmul.f32 0.0078125, %v787_v32 }
 0x1ca   : > { %v789_v34 = vadd.f32 1e-05, %v788_v33 }
 0x1cc   : > { %3218 = vrsqrt.f32 %v789_v34 }
 0x1d6   : > { %v3219_v35 = vpop.eup %3218 }
 0x1d7   : > { %v791_v37 = vmul.f32 %v3219_v35, %v784_v12 }
 0x1d9   : > { %v798_v39 = vmul.f32 %v2697_v36, %v791_v37  ;;  %v3132_v36 = vld [vmem:[%s4159_s19 + $0x10] sm:$0xff]   ;;  %v3133_v37 = vld [vmem:[%s4159_s19 + $0x18] sm:$0xff]  }
 0x1db   : > { %v805_v40 = vadd.f32 %v2698_v38, %v798_v39 }
 0x1dd   : > { %v806_v41 = vpack.c.bf16 %v805_v40, %v805_v40 }
 0x1df   : > { %1016 = vmatmul.mubr.bf16.vlgmr.msra.gmra.mrb[0].mxu0 %v806_v41  ;;  %2918 = vmatmul.mubr.bf16.vlgmr.msra.gmra.mrb[0].mxu1 %v806_v41 }
 0x1e0   : > { %2923 = vmatprep.mubr.msk.bf16.mxu0 %vm3427_vm0, %v3425_v4  ;;  %2929 = vmatprep.mubr.msk.bf16.mxu1 %vm3427_vm0, %v3425_v4 }
 0x2b2   : > { %v1017_v51 = vpop.f32.mrb[0].mxu0  ;;  %v1058_v52 = vpop.f32.mrb[0].mxu1 }
 0x2b3   : > { %v1059_v53 = vadd.f32 %v1058_v52, %v851_v48  ;;  %v1019_v54 = vpop.f32.mrb[1].mxu0  ;;  %v2919_v55 = vpop.f32.mrb[1].mxu1  ;;  %v1018_v62 = vadd.f32 %v1017_v51, %v843_v50 }
 0x2b4   : > { %v1020_v56 = vadd.f32 %v1019_v54, %v847_v49  ;;  %v1021_v57 = vpop.f32.mrb[2].mxu0  ;;  %v1061_v58 = vpop.f32.mrb[2].mxu1  ;;  %v3131_v49 = vld [vmem:[%s4159_s19 + $0x8] sm:$0xff]  }
 0x2b5   : > { %v3850_v59 = vpack.c.bf16 %v1059_v53, %v1059_v53  ;;  %v1022_v60 = vpop.f32.mrb[3].mxu0  ;;  %v2920_v61 = vpop.f32.mrb[3].mxu1  ;;  %v3861_v3 = vpack.c.bf16 %v1018_v62, %v1018_v62 }
 0x2b6   : > { %v3852_v63 = vpack.c.bf16 %v1020_v56, %v1020_v56 }
 0x2b7   : > { %v1132_v0 = vsel %vm1130_vm1, %v3850_v59, 0 }
 0x2b8   : > { %2928 = vmatpush3.bf16.msra.mxu1 %v1132_v0  ;;  %1179 = vrot.lane.b32.xlu1 %v3852_v63, %s3428_s27  ;;  %v1072_v2 = vsel %vm1067_vm2, %v3852_v63, 0 }
 0x2b9   : > { %2922 = vmatpush3.bf16.xpose.msra.mxu0 %v1072_v2  ;;  %2939 = vmatprep.subr.bf16.mxu1 %v3425_v4 }
 0x2ba   : > { %2933 = vmatprep.subr.bf16.mxu0 %v3425_v4 }
 0x2bc   : > { %1176 = vrot.lane.b32.xlu1 %v3861_v3, %s3428_s27 }
 0x2c0   : > { %2924 = vmatmul.mubr.msk.bf16.vlgmr.msra.gmra.mrb[4].mxu0 %vm1067_vm2, %v3861_v3 }
 0x2c1   : > { %2935 = vmatprep.mubr.msk.bf16.mxu0 %vm3427_vm0, %v3425_v4 }
 0x32a   : > { %v1180_v5 = vpop.permute.xlu1 %1179 }
 0x32b   : > { %v1185_v6 = vsel %vm1067_vm2, %v1180_v5, 0 }
 0x32c   : > { %2934 = vmatpush3.bf16.xpose.msra.mxu0 %v1185_v6 }
 0x32d   : > { %2945 = vmatprep.subr.bf16.mxu0 %v3425_v4 }
 0x32e   : > { %v1177_v7 = vpop.permute.xlu1 %1176 }
 0x333   : > { %2936 = vmatmul.mubr.msk.bf16.vlgmr.msra.gmra.mrb[8].mxu0 %vm1067_vm2, %v1177_v7 }
 0x334   : > { %2949 = vmatprep.mubr.msk.bf16.mxu0 %vm3427_vm0, %v3425_v4  ;;  %2946 = vmatpush3.bf16.msra.mxu0 %v3132_v36 }
 0x335   : > { %2947 = vmatprep.subr.bf16.mxu0 %v3425_v4 }
 0x338   : > { %2948 = vmatpush3.bf16.msra.mxu0 %v3133_v37 }
 0x339   : > { %2961 = vmatprep.subr.bf16.mxu0 %v3425_v4 }
 0x393   : > { %v1108_v9 = vpop.f32.mrb[4].mxu0 }
 0x394   : > { %v1109_v10 = vadd.f32 %v1108_v9, %v3880_v8  ;;  %v2925_v11 = vpop.f32.mrb[5].mxu0 }
 0x395   : > { %v1111_v12 = vpop.f32.mrb[6].mxu0 }
 0x396   : > { %v2926_v13 = vpop.f32.mrb[7].mxu0  ;;  %v1115_v14 = vsel %vm1114_vm3, %v1109_v10, -inf }
 0x397   : > { %1116 = vmax.xlane.f32.xlu0 %v1115_v14 }
 0x406   : > { %v1221_v15 = vpop.f32.mrb[8].mxu0 }
 0x407   : > { %v1222_v16 = vadd.f32 %v1221_v15, %v3880_v8  ;;  %v2937_v17 = vpop.f32.mrb[9].mxu0 }
 0x408   : > { %v1224_v18 = vpop.f32.mrb[10].mxu0 }
 0x409   : > { %v2938_v19 = vpop.f32.mrb[11].mxu0  ;;  %v1227_v20 = vsel %vm1114_vm3, %v1222_v16, -inf }
 0x40a   : > { %1228 = vmax.xlane.f32.xlu1 %v1227_v20 }
 0x41b   : > { %1399 = vrot.lane.b32.xlu1 %v3861_v3, %s3429_s28 }
 0x424   : > { %v1117_v21 = vpop.xlane.xlu0 %1116 }
 0x425   : > { %v1118_v22 = vsub.f32 %v1109_v10, %v1117_v21 }
 0x427   : > { %v1119_v23 = vmul.f32 1.442695, %v1118_v22 }
 0x429   : > { %3220 = vpow2.f32 %v1119_v23 }
 0x433   : > { %v3221_v24 = vpop.eup %3220 }
 0x434   : > { %v1121_v25 = vsel %vm1114_vm3, %v3221_v24, 0.0 }
 0x435   : > { %1122 = vadd.xlane.f32.xlu0 %v1121_v25 }
 0x497   : > { %v1229_v27 = vpop.xlane.xlu1 %1228 }
 0x498   : > { %v1230_v28 = vsub.f32 %v1222_v16, %v1229_v27 }
 0x49a   : > { %v1231_v29 = vmul.f32 1.442695, %v1230_v28  ;;  %v3134_v28 = vld [vmem:[%s4159_s19 + $0x20] sm:$0xff]  }
 0x49b   : > { %v1400_v0 = vpop.permute.xlu1 %1399 }
 0x49c   : > { %3222 = vpow2.f32 %v1231_v29 }
 0x4a6   : > { %v3223_v30 = vpop.eup %3222 }
 0x4a7   : > { %v1233_v31 = vsel %vm1114_vm3, %v3223_v30, 0.0 }
 0x4a8   : > { %1234 = vadd.xlane.f32.xlu0 %v1233_v31 }
 0x4be   : > { %1240 = vrot.lane.b32.xlu0 %v3850_v59, %s3428_s27 }
 0x4c2   : > { %v1123_v32 = vpop.xlane.xlu0 %1122  ;;  %1401 = vrot.lane.b32.xlu0 %v3852_v63, %s3429_s28 }
 0x4c3   : > { %3224 = vrcp.f32 %v1123_v32 }
 0x4cd   : > { %v3225_v33 = vpop.eup %3224 }
 0x4ce   : > { %v1125_v34 = vmul.f32 %v3225_v33, %v3221_v24 }
 0x4d0   : > { %v1126_v35 = vpack.c.bf16 %v1125_v34, %v1125_v34  ;;  %v3135_v34 = vld [vmem:[%s4159_s19 + $0x28] sm:$0xff]  }
 0x4d2   : > { %2930 = vmatmul.mubr.msk.bf16.vlgmr.msra.gmra.mrb[4].mxu1 %vm1114_vm3, %v1126_v35 }
 0x4d3   : > { %2941 = vmatprep.mubr.msk.bf16.mxu1 %vm3427_vm0, %v3425_v4 }
 0x535   : > { %v1235_v38 = vpop.xlane.xlu0 %1234 }
 0x536   : > { %3226 = vrcp.f32 %v1235_v38 }
 0x539   : > { %v1241_v39 = vpop.permute.xlu0 %1240 }
 0x53a   : > { %v1246_v40 = vsel %vm1130_vm1, %v1241_v39, 0 }
 0x53b   : > { %2940 = vmatpush3.bf16.msra.mxu1 %v1246_v40 }
 0x53c   : > { %2953 = vmatprep.subr.bf16.mxu1 %v3425_v4 }
 0x53d   : > { %v1402_v55 = vpop.permute.xlu0 %1401 }
 0x53e   : > { %v1407_v61 = vsel %vm1067_vm2, %v1402_v55, 0 }
 0x540   : > { %v3227_v41 = vpop.eup %3226 }
 0x541   : > { %v1237_v42 = vmul.f32 %v3227_v41, %v3223_v30 }
 0x543   : > { %v1238_v48 = vpack.c.bf16 %v1237_v42, %v1237_v42 }
 0x545   : > { %2942 = vmatmul.mubr.msk.bf16.vlgmr.msra.gmra.mrb[8].mxu1 %vm1114_vm3, %v1238_v48 }
 0x546   : > { %2954 = vmatpush3.bf16.msra.mxu1 %v3130_v45  ;;  %2957 = vmatprep.mubr.msk.bf16.mxu1 %vm3427_vm0, %v3425_v4 }
 0x547   : > { %2955 = vmatprep.subr.bf16.mxu1 %v3425_v4 }
 0x54a   : > { %2956 = vmatpush3.bf16.msra.mxu1 %v3131_v49 }
 0x54b   : > { %2967 = vmatprep.subr.bf16.mxu1 %v3425_v4 }
 0x5a5   : > { %v1168_v50 = vpop.f32.mrb[4].mxu1 }
 0x5a6   : > { %v1174_v51 = vpack.c.bf16 %v1168_v50, %v1168_v50  ;;  %v2931_v52 = vpop.f32.mrb[5].mxu1 }
 0x5a7   : > { %v1171_v53 = vpop.f32.mrb[6].mxu1 }
 0x5a8   : > { %v2932_v54 = vpop.f32.mrb[7].mxu1  ;;  %2958 = vmatmul.mubr.msk.bf16.vlgmr.msra.gmra.mrb[12].mxu1 %vm1067_vm2, %v1174_v51 }
 0x5a9   : > { %2969 = vmatprep.mubr.msk.bf16.mxu1 %vm3427_vm0, %v3425_v4 }
 0x618   : > { %v1282_v56 = vpop.f32.mrb[8].mxu1 }
 0x619   : > { %v1288_v57 = vpack.c.bf16 %v1282_v56, %v1282_v56  ;;  %v2943_v58 = vpop.f32.mrb[9].mxu1  ;;  %v3136_v56 = vld [vmem:[%s4159_s19 + $0x30] sm:$0xff]  }
 0x61a   : > { %v1285_v60 = vpop.f32.mrb[10].mxu1 }
 0x61b   : > { %v2944_v62 = vpop.f32.mrb[11].mxu1  ;;  %2950 = vmatmul.mubr.msk.bf16.vlgmr.msra.gmra.mrb[12].mxu0 %vm1067_vm2, %v1288_v57 }
 0x61c   : > { %2962 = vmatpush3.bf16.xpose.msra.mxu0 %v1407_v61  ;;  %2963 = vmatprep.mubr.msk.bf16.mxu0 %vm3427_vm0, %v3425_v4 }
 0x61d   : > { %2973 = vmatprep.subr.bf16.mxu0 %v3425_v4 }
 0x623   : > { %2964 = vmatmul.mubr.msk.bf16.vlgmr.msra.gmra.mrb[16].mxu0 %vm1067_vm2, %v1400_v0 }
 0x624   : > { %2977 = vmatprep.mubr.msk.bf16.mxu0 %vm3427_vm0, %v3425_v4  ;;  %2974 = vmatpush3.bf16.msra.mxu0 %v3134_v28  ;;  %v3155_v28 = vld [vmem:[%s4160_s4 + $0x4c] ss:$16 sps:$4 sm:$0xff]  }
 0x625   : > { %2975 = vmatprep.subr.bf16.mxu0 %v3425_v4 }
 0x628   : > { %2976 = vmatpush3.bf16.msra.mxu0 %v3135_v34  ;;  %v3161_v34 = vld [vmem:[%s4160_s4 + $0x6c] ss:$16 sps:$4 sm:$0xff]  }
 0x629   : > { %2987 = vmatprep.subr.bf16.mxu0 %v3425_v4 }
 0x67b   : > { %v1393_v2 = vpop.f32.mrb[12].mxu1 }
 0x67c   : > { %v2959_v5 = vpop.f32.mrb[13].mxu1 }
 0x67d   : > { %v1396_v6 = vpop.f32.mrb[14].mxu1 }
 0x67e   : > { %v2960_v7 = vpop.f32.mrb[15].mxu1  ;;  %v3137_v6 = vld [vmem:[%s4159_s19 + $0x38] sm:$0xff]  }
 0x6ee   : > { %v1338_v9 = vpop.f32.mrb[12].mxu0 }
 0x6ef   : > { %v3921_v10 = vadd.f32 %v1393_v2, %v1338_v9  ;;  %v2951_v11 = vpop.f32.mrb[13].mxu0 }
 0x6f0   : > { %v1341_v12 = vpop.f32.mrb[14].mxu0 }
 0x6f1   : > { %v2952_v13 = vpop.f32.mrb[15].mxu0 }
 0x6f6   : > { %v1443_v14 = vpop.f32.mrb[16].mxu0 }
 0x6f7   : > { %v1444_v15 = vadd.f32 %v1443_v14, %v3880_v8  ;;  %v2965_v16 = vpop.f32.mrb[17].mxu0 }
 0x6f8   : > { %v1446_v17 = vpop.f32.mrb[18].mxu0  ;;  %v2743_v16 = vld [vmem:[%s4162_s24] ss:$0 sm:$0xff] }
 0x6f9   : > { %v2966_v18 = vpop.f32.mrb[19].mxu0  ;;  %v1449_v19 = vsel %vm1114_vm3, %v1444_v15, -inf }
 0x6fa   : > { %1450 = vmax.xlane.f32.xlu0 %v1449_v19 }
 0x710   : > { %1461 = vrot.lane.b32.xlu0 %v3850_v59, %s3429_s28 }
 0x714   : > { %1566 = vrot.lane.b32.xlu0 %v3861_v3, %s3430_s15 }
 0x787   : > { %v1451_v20 = vpop.xlane.xlu0 %1450 }
 0x788   : > { %v1452_v21 = vsub.f32 %v1444_v15, %v1451_v20  ;;  %v3140_v20 = vld [vmem:[%s4160_s4 + $0x4] ss:$16 sps:$4 sm:$0xff]  }
 0x78a   : > { %v1453_v22 = vmul.f32 1.442695, %v1452_v21  ;;  %v3141_v21 = vld [vmem:[%s4160_s4 + $0x8] ss:$16 sps:$4 sm:$0xff]  }
 0x78b   : > { %v1462_v23 = vpop.permute.xlu0 %1461 }
 0x78c   : > { %3228 = vpow2.f32 %v1453_v22  ;;  %v1467_v24 = vsel %vm1130_vm1, %v1462_v23, 0  ;;  %v3143_v22 = vld [vmem:[%s4160_s4 + $0xc] ss:$16 sps:$4 sm:$0xff]   ;;  %v3146_v23 = vld [vmem:[%s4160_s4 + $0x24] ss:$16 sps:$4 sm:$0xff]  }
 0x78d   : > { %2968 = vmatpush3.bf16.msra.mxu1 %v1467_v24  ;;  %v3149_v24 = vld [vmem:[%s4160_s4 + $0x2c] ss:$16 sps:$4 sm:$0xff]  }
 0x78e   : > { %2981 = vmatprep.subr.bf16.mxu1 %v3425_v4 }
 0x796   : > { %v3229_v25 = vpop.eup %3228 }
 0x797   : > { %v1455_v27 = vsel %vm1114_vm3, %v3229_v25, 0.0 }
 0x798   : > { %1456 = vadd.xlane.f32.xlu1 %v1455_v27  ;;  %v3152_v27 = vld [vmem:[%s4160_s4 + $0x44] ss:$16 sps:$4 sm:$0xff]  }
 0x7a9   : > { %1568 = vrot.lane.b32.xlu1 %v3852_v63, %s3430_s15  ;;  %v1567_v63 = vpop.permute.xlu0 %1566 }
 0x825   : > { %v1457_v3 = vpop.xlane.xlu1 %1456 }
 0x826   : > { %3230 = vrcp.f32 %v1457_v3  ;;  %v3150_v3 = vld [vmem:[%s4160_s4 + $0x40] ss:$16 sps:$4 sm:$0xff]  }
 0x829   : > { %v1569_v31 = vpop.permute.xlu1 %1568 }
 0x82a   : > { %v1574_v33 = vsel %vm1067_vm2, %v1569_v31, 0 }
 0x830   : > { %v3231_v29 = vpop.eup %3230 }
 0x831   : > { %v1459_v30 = vmul.f32 %v3231_v29, %v3229_v25  ;;  %v3147_v25 = vld [vmem:[%s4160_s4 + $0x28] ss:$16 sps:$4 sm:$0xff]  }
 0x832   : > { %v3153_v29 = vld [vmem:[%s4160_s4 + $0x48] ss:$16 sps:$4 sm:$0xff]  }
 0x833   : > { %v1460_v32 = vpack.c.bf16 %v1459_v30, %v1459_v30 }
 0x835   : > { %2970 = vmatmul.mubr.msk.bf16.vlgmr.msra.gmra.mrb[16].mxu1 %vm1114_vm3, %v1460_v32 }
 0x836   : > { %2982 = vmatpush3.bf16.xpose.msra.mxu1 %v1574_v33  ;;  %2983 = vmatprep.mubr.msk.bf16.mxu1 %vm3427_vm0, %v3425_v4 }
 0x837   : > { %2993 = vmatprep.subr.bf16.mxu1 %v3425_v4 }
 0x83d   : > { %2984 = vmatmul.mubr.msk.bf16.vlgmr.msra.gmra.mrb[20].mxu1 %vm1067_vm2, %v1567_v63  ;;  %v3158_v63 = vld [vmem:[%s4160_s4 + $0x64] ss:$16 sps:$4 sm:$0xff]  }
 0x83e   : > { %2997 = vmatprep.mubr.msk.bf16.mxu1 %vm3427_vm0, %v3425_v4  ;;  %2994 = vmatpush3.bf16.msra.mxu1 %v3136_v56 }
 0x83f   : > { %2995 = vmatprep.subr.bf16.mxu1 %v3425_v4 }
 0x842   : > { %2996 = vmatpush3.bf16.msra.mxu1 %v3137_v6  ;;  %v3186_v6 = vld [vmem:[%s3778_s11 + $0x40] sm:$0xff]  }
 0x843   : > { %2021 = vmatprep.subr.bf16.mxu1 %v3143_v22  ;;  %v3202_v22 = vld [vmem:[%s3778_s11 + $0x60] sm:$0xff]  }
 0x908   : > { %v1503_v35 = vpop.f32.mrb[16].mxu1 }
 0x909   : > { %v1509_v36 = vpack.c.bf16 %v1503_v35, %v1503_v35  ;;  %v2971_v37 = vpop.f32.mrb[17].mxu1  ;;  %v3156_v35 = vld [vmem:[%s4160_s4 + $0x60] ss:$16 sps:$4 sm:$0xff]  }
 0x90a   : > { %v1506_v38 = vpop.f32.mrb[18].mxu1  ;;  %v3164_v37 = vld [vmem:[%s4160_s4 + $0x84] ss:$16 sps:$4 sm:$0xff]  }
 0x90b   : > { %v2972_v39 = vpop.f32.mrb[19].mxu1  ;;  %2978 = vmatmul.mubr.msk.bf16.vlgmr.msra.gmra.mrb[20].mxu0 %vm1067_vm2, %v1509_v36  ;;  %v3159_v36 = vld [vmem:[%s4160_s4 + $0x68] ss:$16 sps:$4 sm:$0xff]   ;;  %v3167_v38 = vld [vmem:[%s4160_s4 + $0x8c] ss:$16 sps:$4 sm:$0xff]  }
 0x90c   : > { %2989 = vmatprep.mubr.msk.bf16.mxu0 %vm3427_vm0, %v3425_v4  ;;  %v3162_v39 = vld [vmem:[%s4160_s4 + $0x80] ss:$16 sps:$4 sm:$0xff]  }
 0x910   : > { %v1610_v40 = vpop.f32.mrb[20].mxu1 }
 0x911   : > { %v1611_v41 = vadd.f32 %v1610_v40, %v3880_v8  ;;  %v2985_v42 = vpop.f32.mrb[21].mxu1  ;;  %v3165_v40 = vld [vmem:[%s4160_s4 + $0x88] ss:$16 sps:$4 sm:$0xff]  }
 0x912   : > { %v1613_v45 = vpop.f32.mrb[22].mxu1  ;;  %v3173_v42 = vld [vmem:[%s4160_s4 + $0xac] ss:$16 sps:$4 sm:$0xff]  }
 0x913   : > { %v2986_v48 = vpop.f32.mrb[23].mxu1  ;;  %v1616_v49 = vsel %vm1114_vm3, %v1611_v41, -inf  ;;  %v3168_v45 = vld [vmem:[%s4160_s4 + $0xa0] ss:$16 sps:$4 sm:$0xff]  }
 0x914   : > { %1617 = vmax.xlane.f32.xlu0 %v1616_v49  ;;  %v3171_v48 = vld [vmem:[%s4160_s4 + $0xa8] ss:$16 sps:$4 sm:$0xff]   ;;  %v3176_v49 = vld [vmem:[%s4160_s4 + $0xc4] ss:$16 sps:$4 sm:$0xff]  }
 0x92a   : > { %1628 = vrot.lane.b32.xlu0 %v3850_v59, %s3430_s15 }
 0x9a1   : > { %v1618_v50 = vpop.xlane.xlu0 %1617 }
 0x9a2   : > { %v1619_v51 = vsub.f32 %v1611_v41, %v1618_v50  ;;  %v3170_v41 = vld [vmem:[%s4160_s4 + $0xa4] ss:$16 sps:$4 sm:$0xff]   ;;  %v3179_v50 = vld [vmem:[%s4160_s4 + $0xcc] ss:$16 sps:$4 sm:$0xff]  }
 0x9a4   : > { %v1620_v52 = vmul.f32 1.442695, %v1619_v51  ;;  %v3174_v51 = vld [vmem:[%s4160_s4 + $0xc0] ss:$16 sps:$4 sm:$0xff]  }
 0x9a5   : > { %v1629_v53 = vpop.permute.xlu0 %1628 }
 0x9a6   : > { %3232 = vpow2.f32 %v1620_v52  ;;  %v1634_v54 = vsel %vm1130_vm1, %v1629_v53, 0  ;;  %v3177_v52 = vld [vmem:[%s4160_s4 + $0xc8] ss:$16 sps:$4 sm:$0xff]   ;;  %v3182_v53 = vld [vmem:[%s4160_s4 + $0xe4] ss:$16 sps:$4 sm:$0xff]  }
 0x9a7   : > { %2988 = vmatpush3.bf16.msra.mxu0 %v1634_v54  ;;  %v3185_v54 = vld [vmem:[%s4160_s4 + $0xec] ss:$16 sps:$4 sm:$0xff]  }
 0x9a8   : > { %1980 = vmatprep.subr.bf16.mxu0 %v3140_v20  ;;  %v3200_v20 = vld [vmem:[%s3778_s11 + $0x18] sm:$0xff]  }
 0x9b0   : > { %v3233_v55 = vpop.eup %3232 }
 0x9b1   : > { %v1622_v8 = vsel %vm1114_vm3, %v3233_v55, 0.0 }
 0x9b2   : > { %1623 = vadd.xlane.f32.xlu1 %v1622_v8  ;;  %v3183_v8 = vld [vmem:[%s4160_s4 + $0xe8] ss:$16 sps:$4 sm:$0xff]  }
 0x9de   : > { %v1559_v57 = vpop.f32.mrb[20].mxu0 }
 0x9df   : > { %v1565_v59 = vadd.f32 %v1559_v57, %v3921_v10  ;;  %v2979_v58 = vpop.f32.mrb[21].mxu0 }
 0x9e0   : > { %v1562_v60 = vpop.f32.mrb[22].mxu0 }
 0x9e1   : > { %v2980_v61 = vpop.f32.mrb[23].mxu0  ;;  %v2744_v60 = vld [vmem:[%s732_s13] ss:$0 sm:$0xff] }
 0xa3f   : > { %v1624_v62 = vpop.xlane.xlu1 %1623 }
 0xa40   : > { %3234 = vrcp.f32 %v1624_v62  ;;  %v2745_v62 = vld [vmem:[%s735_s23] ss:$0 sm:$0xff] }
 0xa4a   : > { %v3235_v0 = vpop.eup %3234 }
 0xa4b   : > { %v1626_v2 = vmul.f32 %v3235_v0, %v3233_v55  ;;  %v3180_v55 = vld [vmem:[%s4160_s4 + $0xe0] ss:$16 sps:$4 sm:$0xff]  }
 0xa4d   : > { %v1627_v5 = vpack.c.bf16 %v1626_v2, %v1626_v2 }
 0xa4f   : > { %2990 = vmatmul.mubr.msk.bf16.vlgmr.msra.gmra.mrb[24].mxu0 %vm1114_vm3, %v1627_v5 }
 0xa50   : > { %2012 = vmatprep.mubr.bf16.mxu0 %v3426_v26 }
 0xb22   : > { %v1670_v7 = vpop.f32.mrb[24].mxu0 }
 0xb23   : > { %v1676_v4 = vpack.c.bf16 %v1670_v7, %v1670_v7  ;;  %v2991_v9 = vpop.f32.mrb[25].mxu0  ;;  %v3187_v7 = vld [vmem:[%s3778_s11 + $0xc0] sm:$0xff]  }
 0xb24   : > { %v1673_v10 = vpop.f32.mrb[26].mxu0  ;;  %v3189_v9 = vld [vmem:[%s3778_s11 + $0x80] sm:$0xff]  }
 0xb25   : > { %v2992_v11 = vpop.f32.mrb[27].mxu0  ;;  %2998 = vmatmul.mubr.msk.bf16.vlgmr.msra.gmra.mrb[24].mxu1 %vm1067_vm2, %v1676_v4  ;;  %v3188_v4 = vld [vmem:[%s3778_s11] sm:$0xff]   ;;  %v3190_v10 = vld [vmem:[%s3778_s11 + $0x48] sm:$0xff]  }
 0xb26   : > { %2053 = vmatprep.mubr.bf16.mxu1 %v3426_v26  ;;  %v3138_v26 = vld [vmem:[%s4160_s4] ss:$16 sps:$4 sm:$0xff]   ;;  %2022 = vmatpush1.bf16.msra.mxu1 %v3141_v21  ;;  %v3191_v11 = vld [vmem:[%s3778_s11 + $0xc8] sm:$0xff]   ;;  %v3201_v21 = vld [vmem:[%s3778_s11 + $0x98] sm:$0xff]  }
 0xb27   : > { %1981 = vmatpush1.bf16.msra.mxu0 %v3138_v26  ;;  %2023 = vmatprep.subr.bf16.mxu1 %v3149_v24  ;;  %v3199_v26 = vld [vmem:[%s3778_s11 + $0xd8] sm:$0xff]   ;;  %v3204_v24 = vld [vmem:[%s3778_s11 + $0x20] sm:$0xff]  }
 0xb28   : > { %1982 = vmatprep.subr.bf16.mxu0 %v3146_v23  ;;  %v3203_v23 = vld [vmem:[%s3778_s11 + $0xe0] sm:$0xff]  }
 0xb2a   : > { %2024 = vmatpush1.bf16.msra.mxu1 %v3147_v25  ;;  %v3206_v25 = vld [vmem:[%s3778_s11 + $0x68] sm:$0xff]  }
 0xb2b   : > { %2025 = vmatprep.subr.bf16.mxu1 %v3155_v28  ;;  %v3208_v28 = vld [vmem:[%s3778_s11 + $0x28] sm:$0xff]  }
 0xb2e   : > { %2026 = vmatpush1.bf16.msra.mxu1 %v3153_v29  ;;  %v3210_v29 = vld [vmem:[%s3778_s11 + $0x70] sm:$0xff]  }
 0xb2f   : > { %2027 = vmatprep.subr.bf16.mxu1 %v3161_v34  ;;  %v3216_v34 = vld [vmem:[%s3778_s11 + $0x38] sm:$0xff]  }
 0xb32   : > { %2028 = vmatpush1.bf16.msra.mxu1 %v3159_v36  ;;  %v762_v36 = vld [vmem:[%s3766_s10] sm:$0xf] }
 0xb33   : > { %2029 = vmatprep.subr.bf16.mxu1 %v3167_v38  ;;  %v1803_v38 = vrot.slane %v762_v36, %v842_v47 }
 0xb36   : > { %2030 = vmatpush1.bf16.msra.mxu1 %v3165_v40  ;;  %v1807_v40 = vrot.slane %v762_v36, %v846_v46 }
 0xb37   : > { %2031 = vmatprep.subr.bf16.mxu1 %v3173_v42 }
 0xb3a   : > { %2032 = vmatpush1.bf16.msra.mxu1 %v3171_v48 }
 0xb3b   : > { %2033 = vmatprep.subr.bf16.mxu1 %v3179_v50 }
 0xb3e   : > { %2034 = vmatpush1.bf16.msra.mxu1 %v3177_v52 }
 0xb3f   : > { %2035 = vmatprep.subr.bf16.mxu1 %v3185_v54 }
 0xb42   : > { %2036 = vmatpush1.bf16.msra.mxu1 %v3183_v8 }
 0xb43   : > { %2879 = vmatprep.subr.bf16.mxu1 %v3187_v7 }
 0xbf8   : > { %v1726_v12 = vpop.f32.mrb[24].mxu1 }
 0xbf9   : > { %v1732_v13 = vadd.f32 %v1726_v12, %v1565_v59  ;;  %v2999_v14 = vpop.f32.mrb[25].mxu1  ;;  %v3192_v12 = vld [vmem:[%s3778_s11 + $0x8] sm:$0xff]  }
 0xbfa   : > { %v1729_v15 = vpop.f32.mrb[26].mxu1  ;;  %v3194_v14 = vld [vmem:[%s3778_s11 + $0x50] sm:$0xff]  }
 0xbfb   : > { %v1733_v17 = vadd.f32 %v1732_v13, %v3783_v1  ;;  %v3000_v18 = vpop.f32.mrb[27].mxu1  ;;  %v3144_v1 = vld [vmem:[%s4160_s4 + $0x20] ss:$16 sps:$4 sm:$0xff]   ;;  %v3193_v13 = vld [vmem:[%s3778_s11 + $0x88] sm:$0xff]  }
 0xbfc   : > { %1983 = vmatpush1.bf16.msra.mxu0 %v3144_v1  ;;  %v3195_v15 = vld [vmem:[%s3778_s11 + $0xd0] sm:$0xff]   ;;  %v3198_v18 = vld [vmem:[%s3778_s11 + $0x58] sm:$0xff]   ;;  %v3205_v1 = vld [vmem:[%s3778_s11 + $0xa0] sm:$0xff]  }
 0xbfd   : > { %v3969_v19 = vadd.f32 %v2743_v16, %v1733_v17  ;;  %1984 = vmatprep.subr.bf16.mxu0 %v3152_v27  ;;  %v3196_v16 = vld [vmem:[%s3778_s11 + $0x10] sm:$0xff]   ;;  %v3207_v27 = vld [vmem:[%s3778_s11 + $0xe8] sm:$0xff]  }
 0xbfe   : > { %v3197_v17 = vld [vmem:[%s3778_s11 + $0x90] sm:$0xff]  }
 0xbff   : > { %1741 = vadd.xlane.f32.xlu1 %v3969_v19 }
 0xc00   : > { %1985 = vmatpush1.bf16.msra.mxu0 %v3150_v3  ;;  %v3209_v3 = vld [vmem:[%s3778_s11 + $0xa8] sm:$0xff]  }
 0xc01   : > { %1986 = vmatprep.subr.bf16.mxu0 %v3158_v63  ;;  %v3215_v63 = vld [vmem:[%s3778_s11 + $0xf8] sm:$0xff]  }
 0xc04   : > { %1987 = vmatpush1.bf16.msra.mxu0 %v3156_v35  ;;  %v3217_v35 = vld [vmem:[%s3778_s11 + $0xb8] sm:$0xff]  }
 0xc05   : > { %1988 = vmatprep.subr.bf16.mxu0 %v3164_v37  ;;  %v1814_v37 = vsub.s32 3, %v3838_v43 }
 0xc08   : > { %1989 = vmatpush1.bf16.msra.mxu0 %v3162_v39  ;;  %v1811_v39 = vrot.slane %v762_v36, %v850_v44 }
 0xc09   : > { %1990 = vmatprep.subr.bf16.mxu0 %v3170_v41  ;;  %v1815_v41 = vrot.slane %v762_v36, %v1814_v37 }
 0xc0c   : > { %1991 = vmatpush1.bf16.msra.mxu0 %v3168_v45 }
 0xc0d   : > { %1992 = vmatprep.subr.bf16.mxu0 %v3176_v49 }
 0xc10   : > { %1993 = vmatpush1.bf16.msra.mxu0 %v3174_v51 }
 0xc11   : > { %1994 = vmatprep.subr.bf16.mxu0 %v3182_v53 }
 0xc14   : > { %1995 = vmatpush1.bf16.msra.mxu0 %v3180_v55 }
 0xc15   : > { %2857 = vmatprep.subr.bf16.mxu0 %v3186_v6 }
 0xc8c   : > { %v1742_v30 = vpop.xlane.xlu1 %1741 }
 0xc8d   : > { %v1743_v31 = vmul.f32 0.0078125, %v1742_v30  ;;  %v3211_v30 = vld [vmem:[%s3778_s11 + $0xf0] sm:$0xff]  }
 0xc8f   : > { %v1744_v32 = vsub.f32 %v3969_v19, %v1743_v31  ;;  %v3212_v31 = vld [vmem:[%s3778_s11 + $0x30] sm:$0xff]  }
 0xc91   : > { %v1745_v33 = vmul.f32 %v1744_v32, %v1744_v32 }
 0xc93   : > { %1746 = vadd.xlane.f32.xlu1 %v1745_v33  ;;  %v3214_v33 = vld [vmem:[%s3778_s11 + $0x78] sm:$0xff]  }
 0xd20   : > { %v1747_v56 = vpop.xlane.xlu1 %1746 }
 0xd21   : > { %v1748_v57 = vmul.f32 0.0078125, %v1747_v56 }
 0xd23   : > { %v1749_v59 = vadd.f32 1e-05, %v1748_v57 }
 0xd25   : > { %3236 = vrsqrt.f32 %v1749_v59 }
 0xd2f   : > { %v3237_v58 = vpop.eup %3236 }
 0xd30   : > { %v1751_v61 = vmul.f32 %v3237_v58, %v1744_v32  ;;  %v3213_v32 = vld [vmem:[%s3778_s11 + $0xb0] sm:$0xff]  }
 0xd32   : > { %v1758_v0 = vmul.f32 %v2744_v60, %v1751_v61 }
 0xd34   : > { %v1765_v2 = vadd.f32 %v2745_v62, %v1758_v0 }
 0xd36   : > { %v1766_v5 = vpack.c.bf16 %v1765_v2, %v1765_v2 }
 0xd38   : > { %2013 = vmatmul.mubr.bf16.vlgmr.msra.gmra.mrb[28].mxu0 %v1766_v5  ;;  %2054 = vmatmul.mubr.bf16.vlgmr.msra.gmra.mrb[28].mxu1 %v1766_v5 }
 0xd39   : > { %2858 = vmatpush3.bf16.msra.mxu0 %v3188_v4  ;;  %2880 = vmatpush3.bf16.msra.mxu1 %v3189_v9 }
 0xd3a   : > { %2859 = vmatprep.subr.bf16.mxu0 %v3190_v10  ;;  %2881 = vmatprep.subr.bf16.mxu1 %v3191_v11 }
 0xd3d   : > { %2860 = vmatpush3.bf16.msra.mxu0 %v3192_v12  ;;  %2882 = vmatpush3.bf16.msra.mxu1 %v3193_v13 }
 0xd3e   : > { %2861 = vmatprep.subr.bf16.mxu0 %v3194_v14  ;;  %2883 = vmatprep.subr.bf16.mxu1 %v3195_v15 }
 0xd41   : > { %2862 = vmatpush3.bf16.msra.mxu0 %v3196_v16  ;;  %2884 = vmatpush3.bf16.msra.mxu1 %v3197_v17 }
 0xd42   : > { %2863 = vmatprep.subr.bf16.mxu0 %v3198_v18  ;;  %2885 = vmatprep.subr.bf16.mxu1 %v3199_v26 }
 0xd45   : > { %2864 = vmatpush3.bf16.msra.mxu0 %v3200_v20  ;;  %2886 = vmatpush3.bf16.msra.mxu1 %v3201_v21 }
 0xd46   : > { %2865 = vmatprep.subr.bf16.mxu0 %v3202_v22  ;;  %2887 = vmatprep.subr.bf16.mxu1 %v3203_v23 }
 0xd49   : > { %2866 = vmatpush3.bf16.msra.mxu0 %v3204_v24  ;;  %2888 = vmatpush3.bf16.msra.mxu1 %v3205_v1 }
 0xd4a   : > { %2867 = vmatprep.subr.bf16.mxu0 %v3206_v25  ;;  %2889 = vmatprep.subr.bf16.mxu1 %v3207_v27 }
 0xd4d   : > { %2868 = vmatpush3.bf16.msra.mxu0 %v3208_v28  ;;  %2890 = vmatpush3.bf16.msra.mxu1 %v3209_v3 }
 0xd4e   : > { %2869 = vmatprep.subr.bf16.mxu0 %v3210_v29  ;;  %2891 = vmatprep.subr.bf16.mxu1 %v3211_v30 }
 0xd51   : > { %2870 = vmatpush3.bf16.msra.mxu0 %v3212_v31  ;;  %2892 = vmatpush3.bf16.msra.mxu1 %v3213_v32  ;;  %v2814_v31 = vld [vmem:[%s742_s22] ss:$0 sm:$0xff] }
 0xd52   : > { %2871 = vmatprep.subr.bf16.mxu0 %v3214_v33  ;;  %2893 = vmatprep.subr.bf16.mxu1 %v3215_v63 }
 0xd55   : > { %2872 = vmatpush3.bf16.msra.mxu0 %v3216_v34  ;;  %2894 = vmatpush3.bf16.msra.mxu1 %v3217_v35 }
 0xe0b   : > { %v2014_v42 = vpop.f32.mrb[28].mxu0  ;;  %v2055_v45 = vpop.f32.mrb[28].mxu1 }
 0xe0c   : > { %v2015_v48 = vadd.f32 %v2014_v42, %v1803_v38  ;;  %v2056_v49 = vadd.f32 %v2055_v45, %v1811_v39  ;;  %v2016_v50 = vpop.f32.mrb[29].mxu0  ;;  %v2057_v51 = vpop.f32.mrb[29].mxu1 }
 0xe0d   : > { %v2017_v52 = vadd.f32 %v2016_v50, %v1807_v40  ;;  %v2058_v53 = vadd.f32 %v2057_v51, %v1815_v41  ;;  %v2018_v54 = vpop.f32.mrb[30].mxu0  ;;  %v2059_v55 = vpop.f32.mrb[30].mxu1 }
 0xe0e   : > { %v2778_v8 = vmul.f32 -1.702, %v2015_v48  ;;  %v2780_v56 = vmul.f32 -1.702, %v2056_v49  ;;  %v2019_v47 = vpop.f32.mrb[31].mxu0  ;;  %v2060_v57 = vpop.f32.mrb[31].mxu1 }
 0xe0f   : > { %v2779_v59 = vmul.f32 -1.702, %v2017_v52  ;;  %v2781_v44 = vmul.f32 -1.702, %v2058_v53 }
 0xe10   : > { %v2070_v58 = vmul.f32 1.442695, %v2778_v8  ;;  %v2074_v43 = vmul.f32 1.442695, %v2780_v56 }
 0xe11   : > { %v2072_v46 = vmul.f32 1.442695, %v2779_v59  ;;  %v2076_v60 = vmul.f32 1.442695, %v2781_v44 }
 0xe12   : > { %3238 = vpow2.f32 %v2070_v58 }
 0xe13   : > { %3240 = vpow2.f32 %v2074_v43 }
 0xe14   : > { %3242 = vpow2.f32 %v2072_v46 }
 0xe15   : > { %3244 = vpow2.f32 %v2076_v60 }
 0xe1c   : > { %v3239_v61 = vpop.eup %3238 }
 0xe1d   : > { %v3241_v62 = vpop.eup %3240  ;;  %v2078_v0 = vadd.f32 1.0, %v3239_v61 }
 0xe1e   : > { %v3243_v2 = vpop.eup %3242  ;;  %v2080_v5 = vadd.f32 1.0, %v3241_v62 }
 0xe1f   : > { %v3245_v6 = vpop.eup %3244  ;;  %3246 = vrcp.f32 %v2078_v0  ;;  %v2079_v7 = vadd.f32 1.0, %v3243_v2 }
 0xe20   : > { %3248 = vrcp.f32 %v2080_v5  ;;  %v2081_v4 = vadd.f32 1.0, %v3245_v6 }
 0xe21   : > { %3250 = vrcp.f32 %v2079_v7 }
 0xe22   : > { %3252 = vrcp.f32 %v2081_v4 }
 0xe29   : > { %v3247_v9 = vpop.eup %3246 }
 0xe2a   : > { %v3249_v10 = vpop.eup %3248  ;;  %v2090_v12 = vmul.f32 %v3247_v9, %v2015_v48 }
 0xe2b   : > { %v3251_v11 = vpop.eup %3250  ;;  %v2092_v14 = vmul.f32 %v3249_v10, %v2056_v49 }
 0xe2c   : > { %v3253_v13 = vpop.eup %3252  ;;  %v2091_v15 = vmul.f32 %v3251_v11, %v2017_v52  ;;  %v2094_v18 = vpack.c.bf16 %v2090_v12, %v2090_v12 }
 0xe2d   : > { %v2093_v16 = vmul.f32 %v3253_v13, %v2058_v53  ;;  %v2096_v20 = vpack.c.bf16 %v2092_v14, %v2092_v14 }
 0xe2e   : > { %v2095_v17 = vpack.c.bf16 %v2091_v15, %v2091_v15 }
 0xe2f   : > { %v2097_v26 = vpack.c.bf16 %v2093_v16, %v2093_v16 }
 0xe30   : > { %2386 = vmatprep.mubr.bf16.mxu0 %v2095_v17 }
 0xe31   : > { %2426 = vmatprep.mubr.bf16.mxu1 %v2097_v26  ;;  %2387 = vmatmul.mubr.bf16.vlgmr.msra.gmra.mrb[32].mxu0 %v2094_v18 }
 0xe32   : > { %2427 = vmatmul.mubr.bf16.vlgmr.msra.gmra.mrb[32].mxu1 %v2096_v20 }
 0xf04   : > { %v2873_v21 = vpop.f32.mrb[32].mxu0 }
 0xf05   : > { %v2895_v22 = vpop.f32.mrb[32].mxu1  ;;  %v2874_v23 = vpop.f32.mrb[33].mxu0 }
 0xf06   : > { %v2875_v24 = vadd.f32 %v2874_v23, %v2873_v21  ;;  %v2896_v1 = vpop.f32.mrb[33].mxu1  ;;  %v2876_v25 = vpop.f32.mrb[34].mxu0 }
 0xf07   : > { %v2897_v27 = vadd.f32 %v2896_v1, %v2895_v22  ;;  %v2898_v28 = vpop.f32.mrb[34].mxu1  ;;  %v2877_v3 = vpop.f32.mrb[35].mxu0 }
 0xf08   : > { %v2899_v29 = vpop.f32.mrb[35].mxu1 }
 0xf09   : > { %v2429_v30 = vadd.f32 %v2897_v27, %v2875_v24 }
 0xf0b   : > { %v2434_v32 = vadd.f32 %v2429_v30, %v3969_v19 }
 0xf0d   : > { %v2441_v33 = vadd.f32 %v2814_v31, %v2434_v32 }
 0xf0f   : > { %2442 = vst [vmem:[%s3776_s7] sm:$0xff] %v2441_v33 }
 0xf10 PF: > { %s4166_s11 = sld [smem:[#allocation13_spill]]  ;;  %s4167_s29 = sld [smem:[#allocation9_spill]] }
 0xf11   : > { %s4168_s30 = sld [smem:[#allocation10_spill]]  ;;  %s4169_s15 = sld [smem:[#allocation16_spill]] }
 0xf12   : > { %s4170_s16 = sld [smem:[#allocation11_spill]]  ;;  %s4171_s17 = sld [smem:[#allocation12_spill]] }
 0xf13   : > { %s4172_s18 = sld [smem:[#allocation14_spill]]  ;;  %s4173_s19 = sld [smem:[#allocation15_spill]] }
 0xf16   : > { %s30_s20 = sadd.s32 1, %s4166_s11  }
 0xf17   : > { %p27_p0 = scmp.ge.s32.totalorder %s30_s20, 6  }
 0xf19   :  { %29 = sbr.rel (!%p27_p0) target bundleno = 20 (0x14), region = 177 }
 0xf20   :  { %2462 = vsyncpa [#allocation3], 1 }
 0xf21   :  { %2464 = vsyncpa [#allocation3 + $0x1], 1 }
 0xf22   :  { %2465 = vsyncpa [#allocation5], 1 }
 0xf23   :  { %2467 = vsyncpa [#allocation5 + $0x1], 1 }

</bundles_post_ra>
